<compile_context>
chip_gen: v7x
topology: tpu7x:2x2x1
jax: 0.10.0
libtpu: 0.0.40
codegen_flags: <defaults>
</compile_context>

<pallas_src>
import functools
import math

import jax
import jax.numpy as jnp
from jax.experimental import pallas as pl
from jax.experimental.pallas import tpu as pltpu


# ----------------------------- in-kernel helpers -----------------------------

def _elu(x):
    return jnp.where(x > 0, x, jnp.exp(jnp.minimum(x, 0.0)) - 1.0)


def _gelu(x):
    # TODO(synk): torch.nn.functional.gelu defaults to the exact erf formulation;
    # the tanh approximation is used since erf has no guaranteed Mosaic lowering.
    c = math.sqrt(2.0 / math.pi)
    return 0.5 * x * (1.0 + jnp.tanh(c * (x + 0.044715 * x * x * x)))


# --------------------------------- fused kernel --------------------------------

def _fused_forward_kernel(x_ref, qy_ref, adj_ref, *refs,
                          heads, out_ch, nfeat, nlabel, neg_slope, num_layers,
                          agg_bf16):
    """Entire Denoising_Model forward (all GATsepConv layers + final MLP), one launch.

    refs = per-layer packed param slabs (num_layers), final slab 1, final slab 2, out_ref.
    """
    out_ref = refs[-1]
    final2_ref = refs[-2]
    final1_ref = refs[-3]
    layer_refs = refs[:num_layers]
    HC = heads * out_ch

    qy = qy_ref[...]                                          # [N, nlabel]

    # Edge mask as ONE additive bias tile + per-row scale, built once, reused by every
    # layer/head (removes 2 full [N,N] VPU selects per head per layer).
    edge_f = (adj_ref[...].astype(jnp.float32) != 0.0).astype(jnp.float32)   # [N, N]
    mask_bias = (edge_f - 1.0) * jnp.float32(1e30)            # 0 on edges, -1e30 off
    row_scale = jnp.minimum(jnp.sum(edge_f, axis=1, keepdims=True), 1.0)     # [N, 1]

    h = x_ref[...]                                            # layer-0 node features
    fin = nfeat
    for layer in range(num_layers):                           # num_layers small: unrolled
        S = layer_refs[layer][...]                            # one load of the slab
        o = 0
        w_h = S[o:o + fin]; o += fin                          # [fin, HC]
        w_qy = S[o:o + nlabel]; o += nlabel                   # [nlabel, HC]
        pw1_agg = S[o:o + HC]; o += HC                        # lin_phi L1, agg half
        pw1_x = S[o:o + HC]; o += HC                          # lin_phi L1, x half
        pw2 = S[o:o + HC]; o += HC                            # lin_phi L2
        asrc = S[o:o + 1]; o += 1                             # [1, HC] (head-major)
        adst = S[o:o + 1]; o += 1                             # [1, HC]
        pb1 = S[o:o + 1]; o += 1
        pb2 = S[o:o + 1]; o += 1
        bias_t = S[o:o + 1]                                   # GAT bias + time emb

        # lin_src == lin_dst applied to [h, q_Y] without materializing the concat.
        xw = (jnp.dot(h, w_h, preferred_element_type=jnp.float32)
              + jnp.dot(qy, w_qy, preferred_element_type=jnp.float32))       # [N, HC]

        # Per-head attention logits on the VPU/XLU (block-diag MXU matmuls would fill
        # <13% of lanes); ONE [N,H]->[H,N] relayout per layer instead of H transposes.
        xh_list, a_dst_list, a_src_list = [], [], []
        for hd in range(heads):                               # heads tiny -> unrolled
            lo = hd * out_ch
            xh = xw[:, lo:lo + out_ch]                        # [N, C]
            xh_list.append(xh)
            a_dst_list.append(jnp.sum(xh * adst[:, lo:lo + out_ch],
                                      axis=-1, keepdims=True))               # [N, 1]
            a_src_list.append(jnp.sum(xh * asrc[:, lo:lo + out_ch],
                                      axis=-1, keepdims=True))               # [N, 1]
        a_src_t = jnp.concatenate(a_src_list, axis=-1).T      # [H, N]: single relayout

        agg_list = []
        for hd in range(heads):
            xh = xh_list[hd]
            s = a_dst_list[hd] + a_src_t[hd:hd + 1, :]        # [N, N]: dst_i + src_j
            s = jnp.maximum(s, neg_slope * s)                 # leaky_relu, no select
            s = s + mask_bias                                 # additive mask, no select
            m = jnp.max(s, axis=1, keepdims=True)
            e = jnp.exp(s - m)                                # masked entries -> exact 0
            denom = jnp.sum(e, axis=1, keepdims=True)         # >= 1 always, no clamp
            inv = pl.reciprocal(denom, approx=True) * row_scale   # EUP, not VPU divide
            if agg_bf16:                                      # bf16 MXU path (v6e/v7x)
                agg = jnp.dot(e.astype(jnp.bfloat16), xh.astype(jnp.bfloat16),
                              preferred_element_type=jnp.float32)
            else:
                agg = jnp.dot(e, xh, preferred_element_type=jnp.float32)
            agg_list.append(agg * inv)                        # [N, C]

        # lin_phi layer 1 on [agg, xw] with ONE K=HC matmul for the aggregated half.
        agg_all = jnp.concatenate(agg_list, axis=-1)          # [N, HC]
        h1 = (jnp.dot(agg_all, pw1_agg, preferred_element_type=jnp.float32)
              + jnp.dot(xw, pw1_x, preferred_element_type=jnp.float32)
              + pb1)
        h1 = _gelu(h1)
        h2 = jnp.dot(h1, pw2, preferred_element_type=jnp.float32) + pb2
        h = _elu(h2 + bias_t)                                 # [N, HC]
        fin = HC

    # final MLP on [h, q_Y] (weights split, no concat): Linear -> ELU -> Linear.
    F1 = final1_ref[...]
    fw1_h = F1[:HC]
    fw1_qy = F1[HC:HC + nlabel]
    fb1 = F1[HC + nlabel:HC + nlabel + 1]
    g = (jnp.dot(h, fw1_h, preferred_element_type=jnp.float32)
         + jnp.dot(qy, fw1_qy, preferred_element_type=jnp.float32)
         + fb1)
    g = _elu(g)

    F2 = final2_ref[...]                                      # lane-padded final layer
    fdim2 = 2 * (HC + nlabel)
    fw2 = F2[:fdim2]
    fb2 = F2[fdim2:fdim2 + 1]
    out_ref[...] = jnp.dot(g, fw2, preferred_element_type=jnp.float32) + fb2


# ------------------------------ host-side glue ---------------------------------

def sinusoidal_pos_emb(t, num_steps, dim, rescale=4):
    x = t / num_steps * num_steps * rescale
    half_dim = dim // 2
    emb = math.log(10000.0) / (half_dim - 1)
    emb = jnp.exp(jnp.arange(half_dim, dtype=jnp.float32) * -emb)
    emb = x[:, None] * emb[None, :]
    return jnp.concatenate([jnp.sin(emb), jnp.cos(emb)], axis=-1)


def init_params(key, *, nfeat, nlabel, nhid, nhead, num_layers, num_linears):
    assert num_linears == 2, "implements the 2-layer MLP head (num_linears=2)"
    H, C = nhead, nhid
    HC = H * C
    keys = iter(jax.random.split(key, 8 * num_layers + 16))

    def glorot(shape):
        lim = math.sqrt(6.0 / (shape[0] + shape[-1]))
        return jax.random.uniform(next(keys), shape, jnp.float32, -lim, lim)

    layers = []
    for i in range(num_layers):
        fin = nfeat if i == 0 else HC
        layers.append(dict(
            w=glorot((fin + nlabel, HC)),          # full lin_src weight (rows = [x; q_Y])
            asrc=glorot((H, C)), adst=glorot((H, C)),
            pw1=glorot((2 * HC, HC)),              # lin_phi L1 (rows = [agg; x])
            pb1=jnp.zeros((1, HC), jnp.float32),
            pw2=glorot((HC, HC)), pb2=jnp.zeros((1, HC), jnp.float32),
            bias=jnp.zeros((1, HC), jnp.float32),  # zeros() in reset_parameters
        ))

    fdim = HC + nlabel
    return dict(
        layers=layers,
        time_w1=glorot((128, 128)), time_b1=jnp.zeros((1, 128), jnp.float32),
        time_w2=glorot((128, HC)), time_b2=jnp.zeros((1, HC), jnp.float32),
        final_w1=glorot((fdim, 2 * fdim)),
        final_b1=jnp.zeros((1, 2 * fdim), jnp.float32),
        final_w2=glorot((2 * fdim, nlabel)),
        final_b2=jnp.zeros((1, nlabel), jnp.float32),
    )


def denoising_forward(params, x, q_y, adj, t, num_steps, *, nhead, nhid):
    """adj: dense int8 [N, N]; adj[i, j] != 0 <=> edge j -> i."""
    n, nfeat = x.shape
    nlabel = q_y.shape[1]
    HC = nhead * nhid
    out_pad = ((nlabel + 127) // 128) * 128   # lane-dense output store, sliced after

    # Time embedding MLP: 1-row matmuls -> plain JAX (a dedicated pallas_call launch
    # would cost more than the compute; XLA fuses this for free).
    temb = sinusoidal_pos_emb(t, num_steps, 128)                      # [1, 128]
    th = temb @ params["time_w1"] + params["time_b1"]
    th = jnp.where(th > 0, th, jnp.expm1(jnp.minimum(th, 0.0)))       # ELU
    tfeat = th @ params["time_w2"] + params["time_b2"]                # [1, HC]

    # Pack each layer's 10 tensors into ONE [rows, HC] slab (single DMA per layer).
    layer_slabs = []
    for lp in params["layers"]:
        layer_slabs.append(jnp.concatenate([
            lp["w"],                                   # [fin+nlabel, HC]
            lp["pw1"][:HC], lp["pw1"][HC:],            # agg / x halves of lin_phi L1
            lp["pw2"],
            lp["asrc"].reshape(1, HC), lp["adst"].reshape(1, HC),
            lp["pb1"], lp["pb2"],
            lp["bias"] + tfeat,                        # GAT bias + time emb, once on host
        ], axis=0))

    final1 = jnp.concatenate([params["final_w1"], params["final_b1"]], axis=0)
    final2 = jnp.concatenate([
        jnp.pad(params["final_w2"], ((0, 0), (0, out_pad - nlabel))),
        jnp.pad(params["final_b2"], ((0, 0), (0, out_pad - nlabel))),
    ], axis=0)

    # Generation-dependent knobs (only perf, never correctness, if detection misses).
    kind = jax.devices()[0].device_kind.lower()
    is_v7 = any(s in kind for s in ("v7", "7x"))
    old_gen = any(s in kind for s in ("v2", "v3", "v4", "v5 lite", "v5e", "v5lite"))
    agg_bf16 = not old_gen                              # bf16 MXU-native on v6e/v7x
    vmem_limit = (48 if is_v7 else 100) * 1024 * 1024   # 64 MiB physical on v7x

    args = [x, q_y, adj] + layer_slabs + [final1, final2]
    kernel = functools.partial(
        _fused_forward_kernel, heads=nhead, out_ch=nhid, nfeat=nfeat,
        nlabel=nlabel, neg_slope=0.2, num_layers=len(layer_slabs),
        agg_bf16=agg_bf16)

    vmem = pl.BlockSpec(memory_space=pltpu.MemorySpace.VMEM)
    out = pl.pallas_call(
        kernel,
        out_shape=jax.ShapeDtypeStruct((n, out_pad), jnp.float32),
        in_specs=[vmem] * len(args),
        out_specs=vmem,
        compiler_params=pltpu.CompilerParams(vmem_limit_bytes=vmem_limit),
    )(*args)
    return out[:, :nlabel]


# ----------------------------------- main --------------------------------------

if __name__ == "__main__":
    N, nfeat, nlabel, nhid, nhead = 16, 4, 3, 8, 2
    num_layers, num_linears, num_steps = 2, 2, 100

    key = jax.random.PRNGKey(0)
    k_x, k_y, k_adj, k_p = jax.random.split(key, 4)
    x = jax.random.normal(k_x, (N, nfeat), jnp.float32)
    q_y = jax.random.normal(k_y, (N, nlabel), jnp.float32)
    adj = (jax.random.uniform(k_adj, (N, N)) < 0.3).astype(jnp.int8)   # dense int8 adjacency
    t = jnp.array([7.0], jnp.float32)

    params = init_params(k_p, nfeat=nfeat, nlabel=nlabel, nhid=nhid,
                         nhead=nhead, num_layers=num_layers, num_linears=num_linears)

    pred_y = denoising_forward(params, x, q_y, adj, t, num_steps,
                               nhead=nhead, nhid=nhid)
    pred_y = jax.block_until_ready(pred_y)

    assert pred_y.shape == (N, nlabel), pred_y.shape
    assert bool(jnp.all(jnp.isfinite(pred_y)))
    print("KERNEL_OK")
</pallas_src>

<mosaic_0001>
module attributes {stable_mosaic.version = 11 : i64} {
  func.func @_fused_forward_kernel(%arg0: memref<16x4xf32, #tpu.memory_space<vmem>>, %arg1: memref<16x3xf32, #tpu.memory_space<vmem>>, %arg2: memref<16x16xi8, #tpu.memory_space<vmem>>, %arg3: memref<60x16xf32, #tpu.memory_space<vmem>>, %arg4: memref<72x16xf32, #tpu.memory_space<vmem>>, %arg5: memref<20x38xf32, #tpu.memory_space<vmem>>, %arg6: memref<39x128xf32, #tpu.memory_space<vmem>>, %arg7: memref<16x128xf32, #tpu.memory_space<vmem>>) attributes {dimension_semantics = [], scalar_prefetch = 0 : i64, scratch_operands = 0 : i64, tpu.core_type = #tpu.core_type<tc>} {
    %c0 = arith.constant 0 : index
    %c0_0 = arith.constant 0 : index
    %0 = vector.load %arg1[%c0, %c0_0] : memref<16x3xf32, #tpu.memory_space<vmem>>, vector<16x3xf32>
    %c0_1 = arith.constant 0 : index
    %c0_2 = arith.constant 0 : index
    %1 = vector.load %arg2[%c0_1, %c0_2] : memref<16x16xi8, #tpu.memory_space<vmem>>, vector<16x16xi8>
    %2 = arith.sitofp %1 : vector<16x16xi8> to vector<16x16xf32>
    %cst = arith.constant 0.000000e+00 : f32
    %3 = vector.broadcast %cst : f32 to vector<16x16xf32>
    %4 = arith.cmpf one, %2, %3 : vector<16x16xf32>
    %5 = arith.extui %4 : vector<16x16xi1> to vector<16x16xi32>
    %6 = arith.sitofp %5 : vector<16x16xi32> to vector<16x16xf32>
    %cst_3 = arith.constant 1.000000e+00 : f32
    %7 = vector.broadcast %cst_3 : f32 to vector<16x16xf32>
    %8 = arith.subf %6, %7 : vector<16x16xf32>
    %cst_4 = arith.constant 1.000000e+30 : f32
    %9 = vector.broadcast %cst_4 : f32 to vector<16x16xf32>
    %10 = arith.mulf %8, %9 : vector<16x16xf32>
    %cst_5 = arith.constant dense<0.000000e+00> : vector<16xf32>
    %11 = vector.multi_reduction <add>, %6, %cst_5 [1] : vector<16x16xf32> to vector<16xf32>
    %12 = vector.shape_cast %11 : vector<16xf32> to vector<16x1xf32>
    %cst_6 = arith.constant 1.000000e+00 : f32
    %13 = vector.broadcast %cst_6 : f32 to vector<16x1xf32>
    %14 = arith.minimumf %12, %13 : vector<16x1xf32>
    %c0_7 = arith.constant 0 : index
    %c0_8 = arith.constant 0 : index
    %15 = vector.load %arg0[%c0_7, %c0_8] : memref<16x4xf32, #tpu.memory_space<vmem>>, vector<16x4xf32>
    %c0_9 = arith.constant 0 : index
    %c0_10 = arith.constant 0 : index
    %16 = vector.load %arg3[%c0_9, %c0_10] : memref<60x16xf32, #tpu.memory_space<vmem>>, vector<60x16xf32>
    %17 = vector.extract_strided_slice %16 {offsets = [0, 0], sizes = [4, 16], strides = [1, 1]} : vector<60x16xf32> to vector<4x16xf32>
    %18 = vector.extract_strided_slice %16 {offsets = [4, 0], sizes = [3, 16], strides = [1, 1]} : vector<60x16xf32> to vector<3x16xf32>
    %19 = vector.extract_strided_slice %16 {offsets = [7, 0], sizes = [16, 16], strides = [1, 1]} : vector<60x16xf32> to vector<16x16xf32>
    %20 = vector.extract_strided_slice %16 {offsets = [23, 0], sizes = [16, 16], strides = [1, 1]} : vector<60x16xf32> to vector<16x16xf32>
    %21 = vector.extract_strided_slice %16 {offsets = [39, 0], sizes = [16, 16], strides = [1, 1]} : vector<60x16xf32> to vector<16x16xf32>
    %22 = vector.extract_strided_slice %16 {offsets = [55, 0], sizes = [1, 16], strides = [1, 1]} : vector<60x16xf32> to vector<1x16xf32>
    %23 = vector.extract_strided_slice %16 {offsets = [56, 0], sizes = [1, 16], strides = [1, 1]} : vector<60x16xf32> to vector<1x16xf32>
    %24 = vector.extract_strided_slice %16 {offsets = [57, 0], sizes = [1, 16], strides = [1, 1]} : vector<60x16xf32> to vector<1x16xf32>
    %25 = vector.extract_strided_slice %16 {offsets = [58, 0], sizes = [1, 16], strides = [1, 1]} : vector<60x16xf32> to vector<1x16xf32>
    %26 = vector.extract_strided_slice %16 {offsets = [59, 0], sizes = [1, 16], strides = [1, 1]} : vector<60x16xf32> to vector<1x16xf32>
    %cst_11 = arith.constant dense<0.000000e+00> : vector<16x16xf32>
    %27 = tpu.matmul %15, %17, %cst_11 {dimension_numbers = #tpu.dot_dimension_numbers<[1], [0], [0], [1], [0, 0, 1, 1], [], []>} : vector<16x4xf32>, vector<4x16xf32>, vector<16x16xf32> -> vector<16x16xf32>
    %cst_12 = arith.constant dense<0.000000e+00> : vector<16x16xf32>
    %28 = tpu.matmul %0, %18, %cst_12 {dimension_numbers = #tpu.dot_dimension_numbers<[1], [0], [0], [1], [0, 0, 1, 1], [], []>} : vector<16x3xf32>, vector<3x16xf32>, vector<16x16xf32> -> vector<16x16xf32>
    %29 = arith.addf %27, %28 : vector<16x16xf32>
    %30 = vector.extract_strided_slice %29 {offsets = [0, 0], sizes = [16, 8], strides = [1, 1]} : vector<16x16xf32> to vector<16x8xf32>
    %31 = vector.extract_strided_slice %23 {offsets = [0, 0], sizes = [1, 8], strides = [1, 1]} : vector<1x16xf32> to vector<1x8xf32>
    %32 = vector.broadcast %31 : vector<1x8xf32> to vector<16x8xf32>
    %33 = arith.mulf %30, %32 : vector<16x8xf32>
    %cst_13 = arith.constant dense<0.000000e+00> : vector<16xf32>
    %34 = vector.multi_reduction <add>, %33, %cst_13 [1] : vector<16x8xf32> to vector<16xf32>
    %35 = vector.shape_cast %34 : vector<16xf32> to vector<16x1xf32>
    %36 = vector.extract_strided_slice %22 {offsets = [0, 0], sizes = [1, 8], strides = [1, 1]} : vector<1x16xf32> to vector<1x8xf32>
    %37 = vector.broadcast %36 : vector<1x8xf32> to vector<16x8xf32>
    %38 = arith.mulf %30, %37 : vector<16x8xf32>
    %cst_14 = arith.constant dense<0.000000e+00> : vector<16xf32>
    %39 = vector.multi_reduction <add>, %38, %cst_14 [1] : vector<16x8xf32> to vector<16xf32>
    %40 = vector.shape_cast %39 : vector<16xf32> to vector<16x1xf32>
    %41 = vector.extract_strided_slice %29 {offsets = [0, 8], sizes = [16, 8], strides = [1, 1]} : vector<16x16xf32> to vector<16x8xf32>
    %42 = vector.extract_strided_slice %23 {offsets = [0, 8], sizes = [1, 8], strides = [1, 1]} : vector<1x16xf32> to vector<1x8xf32>
    %43 = vector.broadcast %42 : vector<1x8xf32> to vector<16x8xf32>
    %44 = arith.mulf %41, %43 : vector<16x8xf32>
    %cst_15 = arith.constant dense<0.000000e+00> : vector<16xf32>
    %45 = vector.multi_reduction <add>, %44, %cst_15 [1] : vector<16x8xf32> to vector<16xf32>
    %46 = vector.shape_cast %45 : vector<16xf32> to vector<16x1xf32>
    %47 = vector.extract_strided_slice %22 {offsets = [0, 8], sizes = [1, 8], strides = [1, 1]} : vector<1x16xf32> to vector<1x8xf32>
    %48 = vector.broadcast %47 : vector<1x8xf32> to vector<16x8xf32>
    %49 = arith.mulf %41, %48 : vector<16x8xf32>
    %cst_16 = arith.constant dense<0.000000e+00> : vector<16xf32>
    %50 = vector.multi_reduction <add>, %49, %cst_16 [1] : vector<16x8xf32> to vector<16xf32>
    %51 = vector.shape_cast %50 : vector<16xf32> to vector<16x1xf32>
    %52 = tpu.concatenate %40, %51 in 1 : vector<16x1xf32>, vector<16x1xf32> -> vector<16x2xf32>
    %53 = tpu.transpose %52, [1, 0] : vector<16x2xf32> -> vector<2x16xf32>
    %54 = vector.extract_strided_slice %53 {offsets = [0, 0], sizes = [1, 16], strides = [1, 1]} : vector<2x16xf32> to vector<1x16xf32>
    %55 = vector.broadcast %35 : vector<16x1xf32> to vector<16x16xf32>
    %56 = vector.broadcast %54 : vector<1x16xf32> to vector<16x16xf32>
    %57 = arith.addf %55, %56 : vector<16x16xf32>
    %cst_17 = arith.constant 2.000000e-01 : f32
    %58 = vector.broadcast %cst_17 : f32 to vector<16x16xf32>
    %59 = arith.mulf %58, %57 : vector<16x16xf32>
    %60 = arith.maximumf %57, %59 : vector<16x16xf32>
    %61 = arith.addf %60, %10 : vector<16x16xf32>
    %cst_18 = arith.constant dense<0xFF800000> : vector<16xf32>
    %62 = vector.multi_reduction <maximumf>, %61, %cst_18 [1] : vector<16x16xf32> to vector<16xf32>
    %63 = vector.shape_cast %62 : vector<16xf32> to vector<16x1xf32>
    %64 = vector.broadcast %63 : vector<16x1xf32> to vector<16x16xf32>
    %65 = arith.subf %61, %64 : vector<16x16xf32>
    %66 = math.exp %65 : vector<16x16xf32>
    %cst_19 = arith.constant dense<0.000000e+00> : vector<16xf32>
    %67 = vector.multi_reduction <add>, %66, %cst_19 [1] : vector<16x16xf32> to vector<16xf32>
    %68 = vector.shape_cast %67 : vector<16xf32> to vector<16x1xf32>
    %69 = tpu.reciprocal %68 {approx = true} : vector<16x1xf32> -> vector<16x1xf32>
    %70 = arith.mulf %69, %14 : vector<16x1xf32>
    %71 = arith.truncf %66 : vector<16x16xf32> to vector<16x16xbf16>
    %72 = arith.truncf %30 : vector<16x8xf32> to vector<16x8xbf16>
    %cst_20 = arith.constant dense<0.000000e+00> : vector<16x8xf32>
    %73 = tpu.matmul %71, %72, %cst_20 {dimension_numbers = #tpu.dot_dimension_numbers<[1], [0], [0], [1], [0, 0, 1, 1], [], []>} : vector<16x16xbf16>, vector<16x8xbf16>, vector<16x8xf32> -> vector<16x8xf32>
    %74 = vector.broadcast %70 : vector<16x1xf32> to vector<16x8xf32>
    %75 = arith.mulf %73, %74 : vector<16x8xf32>
    %76 = vector.extract_strided_slice %53 {offsets = [1, 0], sizes = [1, 16], strides = [1, 1]} : vector<2x16xf32> to vector<1x16xf32>
    %77 = vector.broadcast %46 : vector<16x1xf32> to vector<16x16xf32>
    %78 = vector.broadcast %76 : vector<1x16xf32> to vector<16x16xf32>
    %79 = arith.addf %77, %78 : vector<16x16xf32>
    %cst_21 = arith.constant 2.000000e-01 : f32
    %80 = vector.broadcast %cst_21 : f32 to vector<16x16xf32>
    %81 = arith.mulf %80, %79 : vector<16x16xf32>
    %82 = arith.maximumf %79, %81 : vector<16x16xf32>
    %83 = arith.addf %82, %10 : vector<16x16xf32>
    %cst_22 = arith.constant dense<0xFF800000> : vector<16xf32>
    %84 = vector.multi_reduction <maximumf>, %83, %cst_22 [1] : vector<16x16xf32> to vector<16xf32>
    %85 = vector.shape_cast %84 : vector<16xf32> to vector<16x1xf32>
    %86 = vector.broadcast %85 : vector<16x1xf32> to vector<16x16xf32>
    %87 = arith.subf %83, %86 : vector<16x16xf32>
    %88 = math.exp %87 : vector<16x16xf32>
    %cst_23 = arith.constant dense<0.000000e+00> : vector<16xf32>
    %89 = vector.multi_reduction <add>, %88, %cst_23 [1] : vector<16x16xf32> to vector<16xf32>
    %90 = vector.shape_cast %89 : vector<16xf32> to vector<16x1xf32>
    %91 = tpu.reciprocal %90 {approx = true} : vector<16x1xf32> -> vector<16x1xf32>
    %92 = arith.mulf %91, %14 : vector<16x1xf32>
    %93 = arith.truncf %88 : vector<16x16xf32> to vector<16x16xbf16>
    %94 = arith.truncf %41 : vector<16x8xf32> to vector<16x8xbf16>
    %cst_24 = arith.constant dense<0.000000e+00> : vector<16x8xf32>
    %95 = tpu.matmul %93, %94, %cst_24 {dimension_numbers = #tpu.dot_dimension_numbers<[1], [0], [0], [1], [0, 0, 1, 1], [], []>} : vector<16x16xbf16>, vector<16x8xbf16>, vector<16x8xf32> -> vector<16x8xf32>
    %96 = vector.broadcast %92 : vector<16x1xf32> to vector<16x8xf32>
    %97 = arith.mulf %95, %96 : vector<16x8xf32>
    %98 = tpu.concatenate %75, %97 in 1 : vector<16x8xf32>, vector<16x8xf32> -> vector<16x16xf32>
    %cst_25 = arith.constant dense<0.000000e+00> : vector<16x16xf32>
    %99 = tpu.matmul %98, %19, %cst_25 {dimension_numbers = #tpu.dot_dimension_numbers<[1], [0], [0], [1], [0, 0, 1, 1], [], []>} : vector<16x16xf32>, vector<16x16xf32>, vector<16x16xf32> -> vector<16x16xf32>
    %cst_26 = arith.constant dense<0.000000e+00> : vector<16x16xf32>
    %100 = tpu.matmul %29, %20, %cst_26 {dimension_numbers = #tpu.dot_dimension_numbers<[1], [0], [0], [1], [0, 0, 1, 1], [], []>} : vector<16x16xf32>, vector<16x16xf32>, vector<16x16xf32> -> vector<16x16xf32>
    %101 = arith.addf %99, %100 : vector<16x16xf32>
    %102 = vector.broadcast %24 : vector<1x16xf32> to vector<16x16xf32>
    %103 = arith.addf %101, %102 : vector<16x16xf32>
    %cst_27 = arith.constant 5.000000e-01 : f32
    %104 = vector.broadcast %cst_27 : f32 to vector<16x16xf32>
    %105 = arith.mulf %104, %103 : vector<16x16xf32>
    %cst_28 = arith.constant 4.471500e-02 : f32
    %106 = vector.broadcast %cst_28 : f32 to vector<16x16xf32>
    %107 = arith.mulf %106, %103 : vector<16x16xf32>
    %108 = arith.mulf %107, %103 : vector<16x16xf32>
    %109 = arith.mulf %108, %103 : vector<16x16xf32>
    %110 = arith.addf %103, %109 : vector<16x16xf32>
    %cst_29 = arith.constant 0.797884583 : f32
    %111 = vector.broadcast %cst_29 : f32 to vector<16x16xf32>
    %112 = arith.mulf %111, %110 : vector<16x16xf32>
    %113 = math.tanh %112 : vector<16x16xf32>
    %cst_30 = arith.constant 1.000000e+00 : f32
    %114 = vector.broadcast %cst_30 : f32 to vector<16x16xf32>
    %115 = arith.addf %114, %113 : vector<16x16xf32>
    %116 = arith.mulf %105, %115 : vector<16x16xf32>
    %cst_31 = arith.constant dense<0.000000e+00> : vector<16x16xf32>
    %117 = tpu.matmul %116, %21, %cst_31 {dimension_numbers = #tpu.dot_dimension_numbers<[1], [0], [0], [1], [0, 0, 1, 1], [], []>} : vector<16x16xf32>, vector<16x16xf32>, vector<16x16xf32> -> vector<16x16xf32>
    %118 = vector.broadcast %25 : vector<1x16xf32> to vector<16x16xf32>
    %119 = arith.addf %117, %118 : vector<16x16xf32>
    %120 = vector.broadcast %26 : vector<1x16xf32> to vector<16x16xf32>
    %121 = arith.addf %119, %120 : vector<16x16xf32>
    %cst_32 = arith.constant 0.000000e+00 : f32
    %122 = vector.broadcast %cst_32 : f32 to vector<16x16xf32>
    %123 = arith.cmpf ogt, %121, %122 : vector<16x16xf32>
    %cst_33 = arith.constant 0.000000e+00 : f32
    %124 = vector.broadcast %cst_33 : f32 to vector<16x16xf32>
    %125 = arith.minimumf %121, %124 : vector<16x16xf32>
    %126 = math.exp %125 : vector<16x16xf32>
    %cst_34 = arith.constant 1.000000e+00 : f32
    %127 = vector.broadcast %cst_34 : f32 to vector<16x16xf32>
    %128 = arith.subf %126, %127 : vector<16x16xf32>
    %129 = arith.select %123, %121, %128 : vector<16x16xi1>, vector<16x16xf32>
    %c0_35 = arith.constant 0 : index
    %c0_36 = arith.constant 0 : index
    %130 = vector.load %arg4[%c0_35, %c0_36] : memref<72x16xf32, #tpu.memory_space<vmem>>, vector<72x16xf32>
    %131 = vector.extract_strided_slice %130 {offsets = [0, 0], sizes = [16, 16], strides = [1, 1]} : vector<72x16xf32> to vector<16x16xf32>
    %132 = vector.extract_strided_slice %130 {offsets = [16, 0], sizes = [3, 16], strides = [1, 1]} : vector<72x16xf32> to vector<3x16xf32>
    %133 = vector.extract_strided_slice %130 {offsets = [19, 0], sizes = [16, 16], strides = [1, 1]} : vector<72x16xf32> to vector<16x16xf32>
    %134 = vector.extract_strided_slice %130 {offsets = [35, 0], sizes = [16, 16], strides = [1, 1]} : vector<72x16xf32> to vector<16x16xf32>
    %135 = vector.extract_strided_slice %130 {offsets = [51, 0], sizes = [16, 16], strides = [1, 1]} : vector<72x16xf32> to vector<16x16xf32>
    %136 = vector.extract_strided_slice %130 {offsets = [67, 0], sizes = [1, 16], strides = [1, 1]} : vector<72x16xf32> to vector<1x16xf32>
    %137 = vector.extract_strided_slice %130 {offsets = [68, 0], sizes = [1, 16], strides = [1, 1]} : vector<72x16xf32> to vector<1x16xf32>
    %138 = vector.extract_strided_slice %130 {offsets = [69, 0], sizes = [1, 16], strides = [1, 1]} : vector<72x16xf32> to vector<1x16xf32>
    %139 = vector.extract_strided_slice %130 {offsets = [70, 0], sizes = [1, 16], strides = [1, 1]} : vector<72x16xf32> to vector<1x16xf32>
    %140 = vector.extract_strided_slice %130 {offsets = [71, 0], sizes = [1, 16], strides = [1, 1]} : vector<72x16xf32> to vector<1x16xf32>
    %cst_37 = arith.constant dense<0.000000e+00> : vector<16x16xf32>
    %141 = tpu.matmul %129, %131, %cst_37 {dimension_numbers = #tpu.dot_dimension_numbers<[1], [0], [0], [1], [0, 0, 1, 1], [], []>} : vector<16x16xf32>, vector<16x16xf32>, vector<16x16xf32> -> vector<16x16xf32>
    %cst_38 = arith.constant dense<0.000000e+00> : vector<16x16xf32>
    %142 = tpu.matmul %0, %132, %cst_38 {dimension_numbers = #tpu.dot_dimension_numbers<[1], [0], [0], [1], [0, 0, 1, 1], [], []>} : vector<16x3xf32>, vector<3x16xf32>, vector<16x16xf32> -> vector<16x16xf32>
    %143 = arith.addf %141, %142 : vector<16x16xf32>
    %144 = vector.extract_strided_slice %143 {offsets = [0, 0], sizes = [16, 8], strides = [1, 1]} : vector<16x16xf32> to vector<16x8xf32>
    %145 = vector.extract_strided_slice %137 {offsets = [0, 0], sizes = [1, 8], strides = [1, 1]} : vector<1x16xf32> to vector<1x8xf32>
    %146 = vector.broadcast %145 : vector<1x8xf32> to vector<16x8xf32>
    %147 = arith.mulf %144, %146 : vector<16x8xf32>
    %cst_39 = arith.constant dense<0.000000e+00> : vector<16xf32>
    %148 = vector.multi_reduction <add>, %147, %cst_39 [1] : vector<16x8xf32> to vector<16xf32>
    %149 = vector.shape_cast %148 : vector<16xf32> to vector<16x1xf32>
    %150 = vector.extract_strided_slice %136 {offsets = [0, 0], sizes = [1, 8], strides = [1, 1]} : vector<1x16xf32> to vector<1x8xf32>
    %151 = vector.broadcast %150 : vector<1x8xf32> to vector<16x8xf32>
    %152 = arith.mulf %144, %151 : vector<16x8xf32>
    %cst_40 = arith.constant dense<0.000000e+00> : vector<16xf32>
    %153 = vector.multi_reduction <add>, %152, %cst_40 [1] : vector<16x8xf32> to vector<16xf32>
    %154 = vector.shape_cast %153 : vector<16xf32> to vector<16x1xf32>
    %155 = vector.extract_strided_slice %143 {offsets = [0, 8], sizes = [16, 8], strides = [1, 1]} : vector<16x16xf32> to vector<16x8xf32>
    %156 = vector.extract_strided_slice %137 {offsets = [0, 8], sizes = [1, 8], strides = [1, 1]} : vector<1x16xf32> to vector<1x8xf32>
    %157 = vector.broadcast %156 : vector<1x8xf32> to vector<16x8xf32>
    %158 = arith.mulf %155, %157 : vector<16x8xf32>
    %cst_41 = arith.constant dense<0.000000e+00> : vector<16xf32>
    %159 = vector.multi_reduction <add>, %158, %cst_41 [1] : vector<16x8xf32> to vector<16xf32>
    %160 = vector.shape_cast %159 : vector<16xf32> to vector<16x1xf32>
    %161 = vector.extract_strided_slice %136 {offsets = [0, 8], sizes = [1, 8], strides = [1, 1]} : vector<1x16xf32> to vector<1x8xf32>
    %162 = vector.broadcast %161 : vector<1x8xf32> to vector<16x8xf32>
    %163 = arith.mulf %155, %162 : vector<16x8xf32>
    %cst_42 = arith.constant dense<0.000000e+00> : vector<16xf32>
    %164 = vector.multi_reduction <add>, %163, %cst_42 [1] : vector<16x8xf32> to vector<16xf32>
    %165 = vector.shape_cast %164 : vector<16xf32> to vector<16x1xf32>
    %166 = tpu.concatenate %154, %165 in 1 : vector<16x1xf32>, vector<16x1xf32> -> vector<16x2xf32>
    %167 = tpu.transpose %166, [1, 0] : vector<16x2xf32> -> vector<2x16xf32>
    %168 = vector.extract_strided_slice %167 {offsets = [0, 0], sizes = [1, 16], strides = [1, 1]} : vector<2x16xf32> to vector<1x16xf32>
    %169 = vector.broadcast %149 : vector<16x1xf32> to vector<16x16xf32>
    %170 = vector.broadcast %168 : vector<1x16xf32> to vector<16x16xf32>
    %171 = arith.addf %169, %170 : vector<16x16xf32>
    %cst_43 = arith.constant 2.000000e-01 : f32
    %172 = vector.broadcast %cst_43 : f32 to vector<16x16xf32>
    %173 = arith.mulf %172, %171 : vector<16x16xf32>
    %174 = arith.maximumf %171, %173 : vector<16x16xf32>
    %175 = arith.addf %174, %10 : vector<16x16xf32>
    %cst_44 = arith.constant dense<0xFF800000> : vector<16xf32>
    %176 = vector.multi_reduction <maximumf>, %175, %cst_44 [1] : vector<16x16xf32> to vector<16xf32>
    %177 = vector.shape_cast %176 : vector<16xf32> to vector<16x1xf32>
    %178 = vector.broadcast %177 : vector<16x1xf32> to vector<16x16xf32>
    %179 = arith.subf %175, %178 : vector<16x16xf32>
    %180 = math.exp %179 : vector<16x16xf32>
    %cst_45 = arith.constant dense<0.000000e+00> : vector<16xf32>
    %181 = vector.multi_reduction <add>, %180, %cst_45 [1] : vector<16x16xf32> to vector<16xf32>
    %182 = vector.shape_cast %181 : vector<16xf32> to vector<16x1xf32>
    %183 = tpu.reciprocal %182 {approx = true} : vector<16x1xf32> -> vector<16x1xf32>
    %184 = arith.mulf %183, %14 : vector<16x1xf32>
    %185 = arith.truncf %180 : vector<16x16xf32> to vector<16x16xbf16>
    %186 = arith.truncf %144 : vector<16x8xf32> to vector<16x8xbf16>
    %cst_46 = arith.constant dense<0.000000e+00> : vector<16x8xf32>
    %187 = tpu.matmul %185, %186, %cst_46 {dimension_numbers = #tpu.dot_dimension_numbers<[1], [0], [0], [1], [0, 0, 1, 1], [], []>} : vector<16x16xbf16>, vector<16x8xbf16>, vector<16x8xf32> -> vector<16x8xf32>
    %188 = vector.broadcast %184 : vector<16x1xf32> to vector<16x8xf32>
    %189 = arith.mulf %187, %188 : vector<16x8xf32>
    %190 = vector.extract_strided_slice %167 {offsets = [1, 0], sizes = [1, 16], strides = [1, 1]} : vector<2x16xf32> to vector<1x16xf32>
    %191 = vector.broadcast %160 : vector<16x1xf32> to vector<16x16xf32>
    %192 = vector.broadcast %190 : vector<1x16xf32> to vector<16x16xf32>
    %193 = arith.addf %191, %192 : vector<16x16xf32>
    %cst_47 = arith.constant 2.000000e-01 : f32
    %194 = vector.broadcast %cst_47 : f32 to vector<16x16xf32>
    %195 = arith.mulf %194, %193 : vector<16x16xf32>
    %196 = arith.maximumf %193, %195 : vector<16x16xf32>
    %197 = arith.addf %196, %10 : vector<16x16xf32>
    %cst_48 = arith.constant dense<0xFF800000> : vector<16xf32>
    %198 = vector.multi_reduction <maximumf>, %197, %cst_48 [1] : vector<16x16xf32> to vector<16xf32>
    %199 = vector.shape_cast %198 : vector<16xf32> to vector<16x1xf32>
    %200 = vector.broadcast %199 : vector<16x1xf32> to vector<16x16xf32>
    %201 = arith.subf %197, %200 : vector<16x16xf32>
    %202 = math.exp %201 : vector<16x16xf32>
    %cst_49 = arith.constant dense<0.000000e+00> : vector<16xf32>
    %203 = vector.multi_reduction <add>, %202, %cst_49 [1] : vector<16x16xf32> to vector<16xf32>
    %204 = vector.shape_cast %203 : vector<16xf32> to vector<16x1xf32>
    %205 = tpu.reciprocal %204 {approx = true} : vector<16x1xf32> -> vector<16x1xf32>
    %206 = arith.mulf %205, %14 : vector<16x1xf32>
    %207 = arith.truncf %202 : vector<16x16xf32> to vector<16x16xbf16>
    %208 = arith.truncf %155 : vector<16x8xf32> to vector<16x8xbf16>
    %cst_50 = arith.constant dense<0.000000e+00> : vector<16x8xf32>
    %209 = tpu.matmul %207, %208, %cst_50 {dimension_numbers = #tpu.dot_dimension_numbers<[1], [0], [0], [1], [0, 0, 1, 1], [], []>} : vector<16x16xbf16>, vector<16x8xbf16>, vector<16x8xf32> -> vector<16x8xf32>
    %210 = vector.broadcast %206 : vector<16x1xf32> to vector<16x8xf32>
    %211 = arith.mulf %209, %210 : vector<16x8xf32>
    %212 = tpu.concatenate %189, %211 in 1 : vector<16x8xf32>, vector<16x8xf32> -> vector<16x16xf32>
    %cst_51 = arith.constant dense<0.000000e+00> : vector<16x16xf32>
    %213 = tpu.matmul %212, %133, %cst_51 {dimension_numbers = #tpu.dot_dimension_numbers<[1], [0], [0], [1], [0, 0, 1, 1], [], []>} : vector<16x16xf32>, vector<16x16xf32>, vector<16x16xf32> -> vector<16x16xf32>
    %cst_52 = arith.constant dense<0.000000e+00> : vector<16x16xf32>
    %214 = tpu.matmul %143, %134, %cst_52 {dimension_numbers = #tpu.dot_dimension_numbers<[1], [0], [0], [1], [0, 0, 1, 1], [], []>} : vector<16x16xf32>, vector<16x16xf32>, vector<16x16xf32> -> vector<16x16xf32>
    %215 = arith.addf %213, %214 : vector<16x16xf32>
    %216 = vector.broadcast %138 : vector<1x16xf32> to vector<16x16xf32>
    %217 = arith.addf %215, %216 : vector<16x16xf32>
    %cst_53 = arith.constant 5.000000e-01 : f32
    %218 = vector.broadcast %cst_53 : f32 to vector<16x16xf32>
    %219 = arith.mulf %218, %217 : vector<16x16xf32>
    %cst_54 = arith.constant 4.471500e-02 : f32
    %220 = vector.broadcast %cst_54 : f32 to vector<16x16xf32>
    %221 = arith.mulf %220, %217 : vector<16x16xf32>
    %222 = arith.mulf %221, %217 : vector<16x16xf32>
    %223 = arith.mulf %222, %217 : vector<16x16xf32>
    %224 = arith.addf %217, %223 : vector<16x16xf32>
    %cst_55 = arith.constant 0.797884583 : f32
    %225 = vector.broadcast %cst_55 : f32 to vector<16x16xf32>
    %226 = arith.mulf %225, %224 : vector<16x16xf32>
    %227 = math.tanh %226 : vector<16x16xf32>
    %cst_56 = arith.constant 1.000000e+00 : f32
    %228 = vector.broadcast %cst_56 : f32 to vector<16x16xf32>
    %229 = arith.addf %228, %227 : vector<16x16xf32>
    %230 = arith.mulf %219, %229 : vector<16x16xf32>
    %cst_57 = arith.constant dense<0.000000e+00> : vector<16x16xf32>
    %231 = tpu.matmul %230, %135, %cst_57 {dimension_numbers = #tpu.dot_dimension_numbers<[1], [0], [0], [1], [0, 0, 1, 1], [], []>} : vector<16x16xf32>, vector<16x16xf32>, vector<16x16xf32> -> vector<16x16xf32>
    %232 = vector.broadcast %139 : vector<1x16xf32> to vector<16x16xf32>
    %233 = arith.addf %231, %232 : vector<16x16xf32>
    %234 = vector.broadcast %140 : vector<1x16xf32> to vector<16x16xf32>
    %235 = arith.addf %233, %234 : vector<16x16xf32>
    %cst_58 = arith.constant 0.000000e+00 : f32
    %236 = vector.broadcast %cst_58 : f32 to vector<16x16xf32>
    %237 = arith.cmpf ogt, %235, %236 : vector<16x16xf32>
    %cst_59 = arith.constant 0.000000e+00 : f32
    %238 = vector.broadcast %cst_59 : f32 to vector<16x16xf32>
    %239 = arith.minimumf %235, %238 : vector<16x16xf32>
    %240 = math.exp %239 : vector<16x16xf32>
    %cst_60 = arith.constant 1.000000e+00 : f32
    %241 = vector.broadcast %cst_60 : f32 to vector<16x16xf32>
    %242 = arith.subf %240, %241 : vector<16x16xf32>
    %243 = arith.select %237, %235, %242 : vector<16x16xi1>, vector<16x16xf32>
    %c0_61 = arith.constant 0 : index
    %c0_62 = arith.constant 0 : index
    %244 = vector.load %arg5[%c0_61, %c0_62] : memref<20x38xf32, #tpu.memory_space<vmem>>, vector<20x38xf32>
    %245 = vector.extract_strided_slice %244 {offsets = [0, 0], sizes = [16, 38], strides = [1, 1]} : vector<20x38xf32> to vector<16x38xf32>
    %246 = vector.extract_strided_slice %244 {offsets = [16, 0], sizes = [3, 38], strides = [1, 1]} : vector<20x38xf32> to vector<3x38xf32>
    %247 = vector.extract_strided_slice %244 {offsets = [19, 0], sizes = [1, 38], strides = [1, 1]} : vector<20x38xf32> to vector<1x38xf32>
    %cst_63 = arith.constant dense<0.000000e+00> : vector<16x38xf32>
    %248 = tpu.matmul %243, %245, %cst_63 {dimension_numbers = #tpu.dot_dimension_numbers<[1], [0], [0], [1], [0, 0, 1, 1], [], []>} : vector<16x16xf32>, vector<16x38xf32>, vector<16x38xf32> -> vector<16x38xf32>
    %cst_64 = arith.constant dense<0.000000e+00> : vector<16x38xf32>
    %249 = tpu.matmul %0, %246, %cst_64 {dimension_numbers = #tpu.dot_dimension_numbers<[1], [0], [0], [1], [0, 0, 1, 1], [], []>} : vector<16x3xf32>, vector<3x38xf32>, vector<16x38xf32> -> vector<16x38xf32>
    %250 = arith.addf %248, %249 : vector<16x38xf32>
    %251 = vector.broadcast %247 : vector<1x38xf32> to vector<16x38xf32>
    %252 = arith.addf %250, %251 : vector<16x38xf32>
    %cst_65 = arith.constant 0.000000e+00 : f32
    %253 = vector.broadcast %cst_65 : f32 to vector<16x38xf32>
    %254 = arith.cmpf ogt, %252, %253 : vector<16x38xf32>
    %cst_66 = arith.constant 0.000000e+00 : f32
    %255 = vector.broadcast %cst_66 : f32 to vector<16x38xf32>
    %256 = arith.minimumf %252, %255 : vector<16x38xf32>
    %257 = math.exp %256 : vector<16x38xf32>
    %cst_67 = arith.constant 1.000000e+00 : f32
    %258 = vector.broadcast %cst_67 : f32 to vector<16x38xf32>
    %259 = arith.subf %257, %258 : vector<16x38xf32>
    %260 = arith.select %254, %252, %259 : vector<16x38xi1>, vector<16x38xf32>
    %c0_68 = arith.constant 0 : index
    %c0_69 = arith.constant 0 : index
    %261 = vector.load %arg6[%c0_68, %c0_69] : memref<39x128xf32, #tpu.memory_space<vmem>>, vector<39x128xf32>
    %262 = vector.extract_strided_slice %261 {offsets = [0, 0], sizes = [38, 128], strides = [1, 1]} : vector<39x128xf32> to vector<38x128xf32>
    %263 = vector.extract_strided_slice %261 {offsets = [38, 0], sizes = [1, 128], strides = [1, 1]} : vector<39x128xf32> to vector<1x128xf32>
    %cst_70 = arith.constant dense<0.000000e+00> : vector<16x128xf32>
    %264 = tpu.matmul %260, %262, %cst_70 {dimension_numbers = #tpu.dot_dimension_numbers<[1], [0], [0], [1], [0, 0, 1, 1], [], []>} : vector<16x38xf32>, vector<38x128xf32>, vector<16x128xf32> -> vector<16x128xf32>
    %265 = vector.broadcast %263 : vector<1x128xf32> to vector<16x128xf32>
    %266 = arith.addf %264, %265 : vector<16x128xf32>
    %c0_71 = arith.constant 0 : index
    %c0_72 = arith.constant 0 : index
    %267 = vector.load %arg7[%c0_71, %c0_72] : memref<16x128xf32, #tpu.memory_space<vmem>>, vector<16x128xf32>
    tpu.vector_store %arg7[%c0_71, %c0_72], %266 {strides = array<i32>} : memref<16x128xf32, #tpu.memory_space<vmem>>, vector<16x128xf32>,
    return
  }
}

</mosaic_0001>

<bundles_post_ra>
// kernel: tpu_custom_call.1
= control target key start
LH: loop header
LB: loop body
LE: loop exit
PB: predicated region body
PF: predicated region fallthrough
CT: control target
= control target key end

     0   :  { %12 = vsyncpa [#allocation3], 0  ;;  %s2921_s0 = inlined_call_operand.hbm [shape: f32[16,4], index: 0, kind: input, shape index: {}]   ;;  %s2922_s1 = inlined_call_operand.hbm [shape: f32[16,3], index: 1, kind: input, shape index: {}]   ;;  %s2923_s2 = inlined_call_operand.hbm [shape: s8[16,16], index: 2, kind: input, shape index: {}]   ;;  %s2924_s3 = inlined_call_operand.hbm [shape: f32[60,16], index: 3, kind: input, shape index: {}]   ;;  %s2925_s4 = inlined_call_operand.hbm [shape: f32[72,16], index: 4, kind: input, shape index: {}]   ;;  %s2926_s5 = inlined_call_operand.hbm [shape: f32[20,38], index: 5, kind: input, shape index: {}]   ;;  %s2927_s6 = inlined_call_operand.hbm [shape: f32[39,128], index: 6, kind: input, shape index: {}]   ;;  %s2928_s7 = inlined_call_operand.hbm [shape: f32[16,128], index: 7, kind: output, shape index: {}]  }
   0x1   :  { %13 = vsyncpa [#allocation6], 0 }
   0x2   :  { %14 = vsyncpa [#allocation9], 0 }
   0x3   :  { %15 = vsyncpa [#allocation12], 0 }
   0x4   :  { %16 = vsyncpa [#allocation4], 0  ;;  %s2479_s24 = smov [#allocation5]   ;;  %s2480_s26 = smov [#allocation8]  }
   0x5   :  { %s34_s25 = sshll.u32 %s2479_s24, 4  ;;  %s58_s27 = sshll.u32 %s2480_s26, 4  ;;  %s35_s25 = int_to_ptr.vmem [resolvable:$true] %s34_s25  ;;  %s2534_s27 = int_to_ptr.vmem [resolvable:$true] %s58_s27 }
   0x6   :  { %s2293_s30 = scalar_lea.hbm %s2922_s1, 256 }
   0x7   :  { %p2294_p0 = scmp.ne.s32.totalorder %s2922_s1, %s2293_s30  ;;  %p2297_p1 = scmp.lt.u32.totalorder %s2293_s30, %s2922_s1 }
   0x9   :  { %p2299_p2 = pnand %p2297_p1, %p2294_p0 }
   0xb   :  { %2302 = shalt.err (!%p2299_p2)
}
   0xc   :  { %s2303_s12 = scalar_lea.vmem %s35_s25, 256  ;;  %p2308_p4 = scmp.lt.s32.totalorder %s35_s25, %s35_s25 }
   0xd   :  { %p2304_p3 = scmp.ne.s32.totalorder %s35_s25, %s2303_s12  ;;  %p2309_p5 = scmp.lt.s32.totalorder %s2303_s12, %s2303_s12 }
   0xf   :  { %p2310_p6 = por %p2309_p5, %p2308_p4 }
  0x11   :  { %p2311_p7 = pnand %p2310_p6, %p2304_p3 }
  0x13   :  { %2314 = shalt.err (!%p2311_p7)
}
  0x14   :  { %s2481_s13 = smov 128   ;;  %s2482_s14 = smov 8  }
  0x15   :  { %40 = dma.hbm_to_vmem [thread:$0]  %s2922_s1, 256, %s35_s25, [#allocation6], %s2481_s13, %s2481_s13, %s2482_s14  }
  0x16   :  { %s2315_s19 = scalar_lea.hbm %s2924_s3, 1024 }
  0x17   :  { %p2316_p8 = scmp.ne.s32.totalorder %s2924_s3, %s2315_s19  ;;  %p2319_p9 = scmp.lt.u32.totalorder %s2315_s19, %s2924_s3 }
  0x19   :  { %p2321_p10 = pnand %p2319_p9, %p2316_p8 }
  0x1b   :  { %2324 = shalt.err (!%p2321_p10)
}
  0x1c   :  { %s2325_s24 = scalar_lea.vmem %s2534_s27, 1024  ;;  %p2330_p12 = scmp.lt.s32.totalorder %s2534_s27, %s2534_s27 }
  0x1d   :  { %p2326_p11 = scmp.ne.s32.totalorder %s2534_s27, %s2325_s24  ;;  %p2331_p13 = scmp.lt.s32.totalorder %s2325_s24, %s2325_s24 }
  0x1f   :  { %p2332_p0 = por %p2331_p13, %p2330_p12 }
  0x21   :  { %p2333_p1 = pnand %p2332_p0, %p2326_p11 }
  0x23   :  { %2336 = shalt.err (!%p2333_p1)
}
  0x24   :  { %64 = dma.hbm_to_vmem [thread:$0]  %s2924_s3, 1024, %s2534_s27, [#allocation9], %s2481_s13, %s2481_s13, %s2482_s14  }
  0x25   :  { %s2483_s26 = smov [#allocation11]   ;;  %s2484_s29 = smov [#allocation2]  }
  0x26   :  { %s82_s28 = sshll.u32 %s2483_s26, 4  ;;  %s22_s30 = sshll.u32 %s2484_s29, 4  ;;  %s83_s28 = int_to_ptr.vmem [resolvable:$true] %s82_s28  ;;  %s2571_s30 = int_to_ptr.vmem [resolvable:$true] %s22_s30 }
  0x27   :  { %s2337_s10 = scalar_lea.hbm %s2926_s5, 384 }
  0x28   :  { %p2338_p2 = scmp.ne.s32.totalorder %s2926_s5, %s2337_s10  ;;  %p2341_p3 = scmp.lt.u32.totalorder %s2337_s10, %s2926_s5 }
  0x2a   :  { %p2343_p4 = pnand %p2341_p3, %p2338_p2 }
  0x2c   :  { %2346 = shalt.err (!%p2343_p4)
}
  0x2d   :  { %s2347_s3 = scalar_lea.vmem %s83_s28, 384  ;;  %p2352_p6 = scmp.lt.s32.totalorder %s83_s28, %s83_s28 }
  0x2e   :  { %p2348_p5 = scmp.ne.s32.totalorder %s83_s28, %s2347_s3  ;;  %p2353_p7 = scmp.lt.s32.totalorder %s2347_s3, %s2347_s3 }
  0x30   :  { %p2354_p8 = por %p2353_p7, %p2352_p6 }
  0x32   :  { %p2355_p9 = pnand %p2354_p8, %p2348_p5 }
  0x34   :  { %2358 = shalt.err (!%p2355_p9)
}
  0x35   :  { %88 = dma.hbm_to_vmem [thread:$0]  %s2926_s5, 384, %s83_s28, [#allocation12], %s2481_s13, %s2481_s13, %s2482_s14  }
  0x36   :  { %s2359_s20 = scalar_lea.hbm %s2921_s0, 256 }
  0x37   :  { %p2360_p10 = scmp.ne.s32.totalorder %s2921_s0, %s2359_s20  ;;  %p2363_p11 = scmp.lt.u32.totalorder %s2359_s20, %s2921_s0 }
  0x39   :  { %p2365_p12 = pnand %p2363_p11, %p2360_p10 }
  0x3b   :  { %2368 = shalt.err (!%p2365_p12)
}
  0x3c   :  { %s2369_s1 = scalar_lea.vmem %s2571_s30, 256  ;;  %p2374_p0 = scmp.lt.s32.totalorder %s2571_s30, %s2571_s30 }
  0x3d   :  { %p2370_p13 = scmp.ne.s32.totalorder %s2571_s30, %s2369_s1  ;;  %p2375_p1 = scmp.lt.s32.totalorder %s2369_s1, %s2369_s1 }
  0x3f   :  { %p2376_p2 = por %p2375_p1, %p2374_p0 }
  0x41   :  { %p2377_p3 = pnand %p2376_p2, %p2370_p13 }
  0x43   :  { %2380 = shalt.err (!%p2377_p3)
}
  0x44   :  { %28 = dma.hbm_to_vmem [thread:$0]  %s2921_s0, 256, %s2571_s30, [#allocation3], %s2481_s13, %s2481_s13, %s2482_s14  }
  0x45   :  { %s2485_s26 = smov [#allocation7]   ;;  %s2381_s9 = scalar_lea.hbm %s2923_s2, 64 }
  0x46   :  { %s46_s28 = sshll.u32 %s2485_s26, 4  ;;  %p2382_p4 = scmp.ne.s32.totalorder %s2923_s2, %s2381_s9  ;;  %s47_s28 = int_to_ptr.vmem [resolvable:$true] %s46_s28 }
  0x47   :  { %p2385_p5 = scmp.lt.u32.totalorder %s2381_s9, %s2923_s2 }
  0x49   :  { %p2387_p6 = pnand %p2385_p5, %p2382_p4 }
  0x4b   :  { %2390 = shalt.err (!%p2387_p6)
}
  0x4c   :  { %s2391_s16 = scalar_lea.vmem %s47_s28, 64  ;;  %p2396_p8 = scmp.lt.s32.totalorder %s47_s28, %s47_s28 }
  0x4d   :  { %p2392_p7 = scmp.ne.s32.totalorder %s47_s28, %s2391_s16  ;;  %p2397_p9 = scmp.lt.s32.totalorder %s2391_s16, %s2391_s16 }
  0x4f   :  { %p2398_p10 = por %p2397_p9, %p2396_p8 }
  0x51   :  { %p2399_p11 = pnand %p2398_p10, %p2392_p7 }
  0x53   :  { %2402 = shalt.err (!%p2399_p11)
}
  0x54   :  { %s2486_s0 = smov 32   ;;  %s2487_s30 = smov 2  }
  0x55   :  { %52 = dma.hbm_to_vmem [thread:$0]  %s2923_s2, 64, %s47_s28, [#allocation6], %s2486_s0, %s2486_s0, %s2487_s30  }
  0x56   :  { %s2488_s17 = smov [#allocation10]   ;;  %s2489_s19 = smov [#allocation13]  }
  0x57   :  { %s70_s18 = sshll.u32 %s2488_s17, 4  ;;  %s94_s20 = sshll.u32 %s2489_s19, 4  ;;  %s71_s18 = int_to_ptr.vmem [resolvable:$true] %s70_s18  ;;  %s95_s20 = int_to_ptr.vmem [resolvable:$true] %s94_s20 }
  0x58   :  { %s2403_s23 = scalar_lea.hbm %s2925_s4, 1152 }
  0x59   :  { %p2404_p12 = scmp.ne.s32.totalorder %s2925_s4, %s2403_s23  ;;  %p2407_p13 = scmp.lt.u32.totalorder %s2403_s23, %s2925_s4 }
  0x5b   :  { %p2409_p0 = pnand %p2407_p13, %p2404_p12 }
  0x5d   :  { %2412 = shalt.err (!%p2409_p0)
}
  0x5e   :  { %s2413_s2 = scalar_lea.vmem %s71_s18, 1152  ;;  %p2418_p2 = scmp.lt.s32.totalorder %s71_s18, %s71_s18 }
  0x5f   :  { %p2414_p1 = scmp.ne.s32.totalorder %s71_s18, %s2413_s2  ;;  %p2419_p3 = scmp.lt.s32.totalorder %s2413_s2, %s2413_s2 }
  0x61   :  { %p2420_p4 = por %p2419_p3, %p2418_p2 }
  0x63   :  { %p2421_p5 = pnand %p2420_p4, %p2414_p1 }
  0x65   :  { %2424 = shalt.err (!%p2421_p5)
}
  0x66   :  { %76 = dma.hbm_to_vmem [thread:$0]  %s2925_s4, 1152, %s71_s18, [#allocation9], %s2481_s13, %s2481_s13, %s2482_s14  }
  0x67   :  { %s2425_s9 = scalar_lea.hbm %s2927_s6, 640 }
  0x68   :  { %p2426_p6 = scmp.ne.s32.totalorder %s2927_s6, %s2425_s9  ;;  %p2429_p7 = scmp.lt.u32.totalorder %s2425_s9, %s2927_s6 }
  0x6a   :  { %p2431_p8 = pnand %p2429_p7, %p2426_p6 }
  0x6c   :  { %2434 = shalt.err (!%p2431_p8)
}
  0x6d   :  { %s2435_s16 = scalar_lea.vmem %s95_s20, 640  ;;  %p2440_p10 = scmp.lt.s32.totalorder %s95_s20, %s95_s20 }
  0x6e   :  { %p2436_p9 = scmp.ne.s32.totalorder %s95_s20, %s2435_s16  ;;  %p2441_p11 = scmp.lt.s32.totalorder %s2435_s16, %s2435_s16 }
  0x70   :  { %p2442_p12 = por %p2441_p11, %p2440_p10 }
  0x72   :  { %p2443_p13 = pnand %p2442_p12, %p2436_p9 }
  0x74   :  { %2446 = shalt.err (!%p2443_p13)
}
  0x75   :  { %100 = dma.hbm_to_vmem [thread:$0]  %s2927_s6, 640, %s95_s20, [#allocation12], %s2481_s13, %s2481_s13, %s2482_s14  }
  0x76   :  { %2469 = dma.done.wait [#allocation3], 256  }
  0x77   :  { %2470 = vsyncadd [#allocation3], 4294967040 }
  0x78   :  { %2471 = dma.done.wait [#allocation6], 320  }
  0x79   :  { %2472 = vsyncadd [#allocation6], 4294966976 }
  0x7a   :  { %2473 = dma.done.wait [#allocation9], 2176  }
  0x7b   :  { %2474 = vsyncadd [#allocation9], 4294965120 }
  0x7c   :  { %2475 = dma.done.wait [#allocation12], 1024  }
  0x7d   :  { %2476 = vsyncadd [#allocation12], 4294966272  ;;  %vm162_vm0 = vcmask 23552   ;;  %v2650_v0 = vld [vmem:[#allocation8] sm:$0xff]  ;;  %vm169_vm1 = vcmask 1042432   ;;  %v2652_v1 = vld [vmem:[#allocation5] sm:$0xff]  ;;  %v332_v7 = vlaneseq }
  0x7e   :  { %v161_v2 = vrot.slane %v2650_v0, 4  ;;  %2065 = vmatprep.mubr.msk.f32.mxu0 %vm162_vm0, %v2652_v1  ;;  %v2657_v3 = vld [vmem:[#allocation5 + $0x8] sm:$0xff]  ;;  %vm254_vm2 = vcmask 1043456   ;;  %v150_v4 = vld [vmem:[#allocation2] sm:$0xff]  ;;  %vm247_vm3 = vcmask 31744   ;;  %v151_v5 = vld [vmem:[#allocation2 + $0x8] sm:$0xff] }
  0x7f   :  { %v2490_v6 = vmov 0.0   ;;  %v2667_v8 = vshrl.u32 %v332_v7, 7  ;;  %v2673_v11 = vld [vmem:[#allocation8 + $0x30] sm:$0xff]  ;;  %v2675_v12 = vld [vmem:[#allocation8 + $0x38] sm:$0xf]  ;;  %s2491_s6 = smov 120  }
  0x80   :  { %2063 = vmatprep.subr.msk.mxu0 %vm169_vm1, %v161_v2  ;;  %2073 = vmatprep.subr.bf16.mxu1 %v2490_v6  ;;  %vm338_vm4 = vcmask 64512   ;;  %vm385_vm5 = vcmask 7168   ;;  %v2001_v40 = vld [vmem:[#allocation7] sm:$0xf]   ;;  %vm141_vm8 = vcmask 130048   ;;  %vm2492_vm9 = vmmov 0  }
  0x81   :  { %2064 = vmatpush3.msk.msra.mxu0 %vm169_vm1, %v161_v2  ;;  %v347_v9 = vsub.s32 7, %v2667_v8  ;;  %v2671_v10 = vsub.s32 0, %v2667_v8  ;;  %v2002_v41 = vunpack.c.0.s8 %v2001_v40  ;;  %v2003_v42 = vunpack.c.1.s8 %v2001_v40  ;;  %2075 = vmatprep.mubr.msk.bf16.mxu1 %vm2492_vm9, %v2490_v6  ;;  %s2493_s30 = smov [#allocation14]  }
  0x82   :  { %2066 = vmatmul.mubr.msk.f32.vlgmr.msra.gmra.mrb[0].mxu0 %vm162_vm0, %v2657_v3  ;;  %2068 = vmatprep.subr.msk.mxu0 %vm254_vm2, %v2650_v0  ;;  %v2710_v48 = vsub.s32 1, %v2667_v8  ;;  %vm600_vm10 = vcmask 1040384   ;;  %vm1346_vm13 = vcmask 1044480   ;;  %s1940_s3 = sshll.u32 %s2493_s30, 4  ;;  %s1941_s3 = int_to_ptr.vmem [resolvable:$true] %s1940_s3 }
  0x83   :  { %2069 = vmatpush3.msk.msra.mxu0 %vm254_vm2, %v2650_v0  ;;  %2070 = vmatprep.mubr.msk.f32.mxu0 %vm247_vm3, %v150_v4  ;;  %v348_v13 = vrot.slane %v2673_v11, %v347_v9  ;;  %v335_v14 = vrot.slane %v2675_v12, %v2671_v10  ;;  %v129_v44 = vcvt.s32.f32 %v2002_v41  ;;  %v130_v45 = vcvt.s32.f32 %v2003_v42  ;;  %s2447_s27 = scalar_lea.vmem %s1941_s3, 256  ;;  %p2452_p1 = scmp.lt.s32.totalorder %s1941_s3, %s1941_s3 }
  0x84   :  { %2079 = vmatprep.subr.bf16.mxu0 %v2490_v6  ;;  %p2448_p0 = scmp.ne.s32.totalorder %s1941_s3, %s2447_s27  ;;  %p2453_p2 = scmp.lt.s32.totalorder %s2447_s27, %s2447_s27 }
  0x85   :  { %vm131_vm6 = vcmp.ne.f32.partialorder %v129_v44, 0.0  ;;  %vm132_vm7 = vcmp.ne.f32.partialorder %v130_v45, 0.0 }
  0x86   :  { %v2713_v49 = vsel %vm131_vm6, 1.0, %v2490_v6  ;;  %v2716_v50 = vsel %vm132_vm7, 1.0, %v2490_v6  ;;  %p2454_p3 = por %p2453_p2, %p2452_p1 }
  0x87   :  { %v1957_v52 = vadd.f32 -1.0, %v2713_v49  ;;  %v1958_v55 = vadd.f32 -1.0, %v2716_v50 }
  0x88   :  { %p2455_p4 = pnand %p2454_p3, %p2448_p0 }
  0x89   :  { %v2722_v60 = vmul.f32 1e+30, %v1957_v52  ;;  %v2724_v63 = vmul.f32 1e+30, %v1958_v55 }
  0x8a   :  { %2071 = vmatmul.mubr.msk.f32.vlgmr.msra.gmra.mrb[0].mxu0 %vm247_vm3, %v151_v5 }
  0x8b   :  { %2081 = vmatprep.mubr.msk.bf16.mxu0 %vm2492_vm9, %v2490_v6 }
 0x15d   :  { %v2682_v15 = vpop.f32.mrb[0].mxu0 }
 0x15e   :  { %v2684_v16 = vpop.f32.mrb[1].mxu0  ;;  %v350_v20 = vmul.f32 %v2682_v15, %v348_v13  ;;  %v337_v21 = vmul.f32 %v2682_v15, %v335_v14 }
 0x15f   :  { %v2688_v17 = vpack.c.bf16 %v2682_v15, %v2684_v16  ;;  %v349_v18 = vmul.f32 %v348_v13, %v2684_v16  ;;  %v336_v19 = vmul.f32 %v335_v14, %v2684_v16 }
 0x160   :  { %v354_v23 = vsel %vm338_vm4, %v350_v20, 0.0  ;;  %v342_v33 = vsel %vm338_vm4, %v337_v21, 0.0 }
 0x161   :  { %2074 = vmatpush3.bf16.msra.mxu1 %v2688_v17  ;;  %373 = vrot.lane.b32.xlu0 %v349_v18, %s2491_s6  ;;  %v351_v22 = vsel %vm338_vm4, %v349_v18, 0.0  ;;  %v339_v32 = vsel %vm338_vm4, %v336_v19, 0.0 }
 0x162   :  { %359 = vrot.lane.b32.xlu1 %v336_v19, %s2491_s6 }
 0x165   :  { %375 = vrot.lane.b32.xlu0 %v350_v20, %s2491_s6 }
 0x166   :  { %361 = vrot.lane.b32.xlu1 %v337_v21, %s2491_s6 }
 0x184   :  { %352 = vadd.xlane.f32.xlu0 %v351_v22 }
 0x188   :  { %355 = vadd.xlane.f32.xlu0 %v354_v23 }
 0x1d3   :  { %v374_v24 = vpop.permute.xlu0 %373 }
 0x1d4   :  { %v360_v25 = vpop.permute.xlu1 %359  ;;  %v379_v26 = vsel %vm338_vm4, %v374_v24, 0.0 }
 0x1d5   :  { %380 = vadd.xlane.f32.xlu1 %v379_v26  ;;  %v365_v29 = vsel %vm338_vm4, %v360_v25, 0.0 }
 0x1d7   :  { %v376_v27 = vpop.permute.xlu0 %375 }
 0x1d8   :  { %v382_v28 = vsel %vm338_vm4, %v376_v27, 0.0  ;;  %v362_v30 = vpop.permute.xlu1 %361  ;;  %v154_v27 = vld [vmem:[#allocation8 + $0x10] sm:$0xff] }
 0x1d9   :  { %383 = vadd.xlane.f32.xlu0 %v382_v28  ;;  %366 = vadd.xlane.f32.xlu1 %v365_v29  ;;  %v368_v31 = vsel %vm338_vm4, %v362_v30, 0.0  ;;  %v155_v28 = vld [vmem:[#allocation8 + $0x18] sm:$0xff]  ;;  %v2740_v29 = vld [vmem:[#allocation8 + $0x20] sm:$0xff] }
 0x1da   :  { %v602_v30 = vrot.slane %v155_v28, 7 }
 0x1dd   :  { %369 = vadd.xlane.f32.xlu0 %v368_v31  ;;  %v604_v31 = vrot.slane %v2740_v29, 7 }
 0x1e1   :  { %340 = vadd.xlane.f32.xlu0 %v339_v32 }
 0x1e5   :  { %343 = vadd.xlane.f32.xlu0 %v342_v33  ;;  %v605_v33 = vsel %vm600_vm10, %v602_v30, %v604_v31 }
 0x211   :  { %v353_v34 = vpop.xlane.xlu0 %352 }
 0x215   :  { %v356_v35 = vpop.xlane.xlu0 %355 }
 0x262   :  { %v381_v36 = vpop.xlane.xlu1 %380 }
 0x263   :  { %v386_v37 = vsel %vm385_vm5, %v353_v34, %v381_v36 }
 0x264   :  { %388 = vxpose.xlu1.b32.start [1/2] (short) (narrow) %v386_v37, 8 }
 0x266   :  { %v384_v38 = vpop.xlane.xlu0 %383  ;;  %v367_v46 = vpop.xlane.xlu1 %366 }
 0x267   :  { %v387_v39 = vsel %vm385_vm5, %v356_v35, %v384_v38 }
 0x268   :  { %389 = vxpose.xlu1.b32.end [2/2] (short) (narrow) %v387_v39, 8 }
 0x26a   :  { %v370_v43 = vpop.xlane.xlu0 %369 }
 0x26e   :  { %v341_v47 = vpop.xlane.xlu0 %340 }
 0x272   :  { %v344_v56 = vpop.xlane.xlu0 %343 }
 0x2e4   :  { %v404_v51 = vpop.trf.xlu1 }
 0x2e5   :  { %v423_v53 = vrot.slane %v404_v51, %v2671_v10  ;;  %v505_v54 = vrot.slane %v404_v51, %v2710_v48  ;;  %v145_v51 = vsel %vm141_vm8, %v2716_v50, 0.0  ;;  %v153_v50 = vld [vmem:[#allocation8 + $0x8] sm:$0xff] }
 0x2e7   :  { %v425_v57 = vadd.f32 %v423_v53, %v344_v56  ;;  %v506_v58 = vadd.f32 %v505_v54, %v367_v46  ;;  %v507_v59 = vadd.f32 %v505_v54, %v370_v43  ;;  %v424_v22 = vadd.f32 %v423_v53, %v341_v47 }
 0x2e8   :  { %v142_v47 = vsel %vm141_vm8, %v2713_v49, 0.0 }
 0x2e9   :  { %v427_v61 = vmul.f32 0.2, %v425_v57  ;;  %v508_v62 = vmul.f32 0.2, %v506_v58  ;;  %v509_v2 = vmul.f32 0.2, %v507_v59 }
 0x2ea   :  { %v426_v23 = vmul.f32 0.2, %v424_v22 }
 0x2eb   :  { %v510_v4 = vmax.f32 %v506_v58, %v508_v62  ;;  %v429_v5 = vmax.f32 %v425_v57, %v427_v61  ;;  %v511_v7 = vmax.f32 %v507_v59, %v509_v2  ;;  %v690_v2 = vrot.slane %v2650_v0, 7 }
 0x2ec   :  { %v428_v24 = vmax.f32 %v424_v22, %v426_v23 }
 0x2ed   :  { %v512_v13 = vadd.f32 %v510_v4, %v2722_v60  ;;  %v431_v14 = vadd.f32 %v429_v5, %v2724_v63  ;;  %v513_v20 = vadd.f32 %v511_v7, %v2724_v63  ;;  %v691_v4 = vrot.slane %v153_v50, 7 }
 0x2ee   :  { %v430_v25 = vadd.f32 %v428_v24, %v2722_v60 }
 0x2ef   :  { %v514_v18 = vsel %vm141_vm8, %v512_v13, -inf  ;;  %v435_v19 = vsel %vm141_vm8, %v431_v14, -inf  ;;  %v517_v21 = vsel %vm141_vm8, %v513_v20, -inf  ;;  %v692_v5 = vsel %vm600_vm10, %v690_v2, %v691_v4 }
 0x2f0   :  { %515 = vmax.xlane.f32.xlu0 %v514_v18  ;;  %436 = vmax.xlane.f32.xlu1 %v435_v19  ;;  %v432_v26 = vsel %vm141_vm8, %v430_v25, -inf }
 0x2f4   :  { %518 = vmax.xlane.f32.xlu0 %v517_v21 }
 0x30a   :  { %538 = vrot.lane.b32.xlu0 %v2688_v17, %s2491_s6  ;;  %v601_v17 = vrot.slane %v154_v27, 7 }
 0x30c   :  { %v603_v32 = vsel %vm600_vm10, %v601_v17, %v602_v30  ;;  %v693_v7 = vsel %vm600_vm10, %v691_v4, %v601_v17 }
 0x30d   :  { %v2176_v34 = vpack.c.bf16 %v605_v33, %v603_v32 }
 0x30f   :  { %2177 = vmatprep.subr.bf16.mxu1 %v2176_v34 }
 0x329   :  { %433 = vmax.xlane.f32.xlu0 %v432_v26 }
 0x37d   :  { %v516_v35 = vpop.xlane.xlu0 %515  ;;  %v437_v52 = vpop.xlane.xlu1 %436 }
 0x37e   :  { %v520_v36 = vsub.f32 %v512_v13, %v516_v35  ;;  %v439_v53 = vsub.f32 %v431_v14, %v437_v52  ;;  %v2180_v13 = vpack.c.bf16 %v693_v7, %v692_v5 }
 0x380   :  { %v522_v37 = vmul.f32 1.442695, %v520_v36  ;;  %v442_v54 = vmul.f32 1.442695, %v439_v53 }
 0x381   :  { %v519_v38 = vpop.xlane.xlu0 %518 }
 0x382   :  { %v521_v39 = vsub.f32 %v513_v20, %v519_v38  ;;  %2241 = vpow2.f32 %v522_v37 }
 0x384   :  { %v524_v40 = vmul.f32 1.442695, %v521_v39 }
 0x385   :  { %v539_v41 = vpop.permute.xlu0 %538 }
 0x386   :  { %2243 = vpow2.f32 %v524_v40  ;;  %2080 = vmatpush3.bf16.msra.mxu0 %v539_v41 }
 0x387   :  { %2245 = vpow2.f32 %v442_v54 }
 0x38c   :  { %v2242_v42 = vpop.eup %2241 }
 0x38d   :  { %v526_v43 = vsel %vm141_vm8, %v2242_v42, 0.0 }
 0x38e   :  { %527 = vadd.xlane.f32.xlu0 %v526_v43 }
 0x390   :  { %v2244_v44 = vpop.eup %2243 }
 0x391   :  { %v529_v45 = vsel %vm141_vm8, %v2244_v44, 0.0  ;;  %v536_v46 = vpack.c.bf16 %v2244_v44, %v2242_v42  ;;  %v2246_v58 = vpop.eup %2245 }
 0x392   :  { %530 = vadd.xlane.f32.xlu0 %v529_v45  ;;  %v447_v49 = vsel %vm141_vm8, %v2246_v58, 0.0 }
 0x393   :  { %2082 = vmatmul.mubr.msk.bf16.vlgmr.msra.gmra.mrb[4].mxu0 %vm141_vm8, %v536_v46 }
 0x396   :  { %143 = vadd.xlane.f32.xlu0 %v142_v47  ;;  %v809_v47 = vrot.slane %v2673_v11, 7 }
 0x39a   :  { %146 = vadd.xlane.f32.xlu0 %v145_v51  ;;  %v157_v51 = vld [vmem:[#allocation8 + $0x28] sm:$0xff] }
 0x39b   :  { %v807_v52 = vrot.slane %v157_v51, 7  ;;  %v2813_v51 = vld [vmem:[#allocation10 + $0x40] sm:$0xff] }
 0x39d   :  { %v808_v53 = vsel %vm600_vm10, %v604_v31, %v807_v52  ;;  %v810_v54 = vsel %vm600_vm10, %v807_v52, %v809_v47  ;;  %v1082_v47 = vsub.s32 4, %v2667_v8 }
 0x3b6   :  { %v434_v55 = vpop.xlane.xlu0 %433 }
 0x3b7   :  { %v438_v56 = vsub.f32 %v430_v25, %v434_v55  ;;  %v2184_v55 = vpack.c.bf16 %v810_v54, %v808_v53  ;;  %v1083_v53 = vrot.slane %v2813_v51, %v1082_v47 }
 0x3b9   :  { %v440_v57 = vmul.f32 1.442695, %v438_v56  ;;  %2185 = vmatprep.subr.bf16.mxu0 %v2184_v55  ;;  %v780_v56 = vrot.slane %v2675_v12, %v2710_v48 }
 0x3ba   :  { %2187 = vmatpush3.bf16.msra.mxu0 %v2184_v55 }
 0x3bb   :  { %2247 = vpow2.f32 %v440_v57  ;;  %2118 = vmatprep.subr.bf16.mxu0 %v2490_v6 }
 0x3c5   :  { %v2248_v59 = vpop.eup %2247 }
 0x3c6   :  { %v444_v61 = vsel %vm141_vm8, %v2248_v59, 0.0  ;;  %v454_v62 = vpack.c.bf16 %v2246_v58, %v2248_v59 }
 0x3c7   :  { %445 = vadd.xlane.f32.xlu0 %v444_v61 }
 0x3c8   :  { %2076 = vmatmul.mubr.msk.bf16.vlgmr.msra.gmra.mrb[0].mxu1 %vm141_vm8, %v454_v62 }
 0x3c9   :  { %2089 = vmatprep.mubr.msk.f32.mxu1 %vm141_vm8, %v2684_v16  ;;  %2179 = vmatpush3.bf16.msra.mxu1 %v2176_v34 }
 0x3ca   :  { %2181 = vmatprep.subr.bf16.mxu1 %v2180_v13 }
 0x3cb   :  { %448 = vadd.xlane.f32.xlu0 %v447_v49 }
 0x3d0   :  { %2090 = vmatmul.mubr.msk.f32.vlgmr.msra.gmra.mrb[4].mxu1 %vm141_vm8, %v2682_v15 }
 0x3d1   :  { %2183 = vmatpush3.bf16.msra.mxu1 %v2180_v13 }
 0x41b   :  { %v528_v14 = vpop.xlane.xlu0 %527 }
 0x41c   :  { %2249 = vrcp.f32 %v528_v14 }
 0x41f   :  { %v531_v16 = vpop.xlane.xlu0 %530 }
 0x420   :  { %2251 = vrcp.f32 %v531_v16 }
 0x423   :  { %v144_v18 = vpop.xlane.xlu0 %143 }
 0x424   :  { %v2764_v20 = vmin.f32 %v144_v18, 1.0 }
 0x426   :  { %v2250_v15 = vpop.eup %2249 }
 0x427   :  { %v147_v19 = vpop.xlane.xlu0 %146  ;;  %v534_v22 = vmul.f32 %v2250_v15, %v2764_v20 }
 0x428   :  { %v2766_v21 = vmin.f32 %v147_v19, 1.0 }
 0x42a   :  { %v2252_v0 = vpop.eup %2251 }
 0x42b   :  { %v535_v26 = vmul.f32 %v2252_v0, %v2766_v21 }
 0x454   :  { %v446_v35 = vpop.xlane.xlu0 %445 }
 0x455   :  { %2253 = vrcp.f32 %v446_v35 }
 0x458   :  { %v449_v36 = vpop.xlane.xlu0 %448 }
 0x459   :  { %2255 = vrcp.f32 %v449_v36 }
 0x45f   :  { %v2254_v37 = vpop.eup %2253 }
 0x460   :  { %v452_v39 = vmul.f32 %v2254_v37, %v2764_v20 }
 0x463   :  { %v2256_v38 = vpop.eup %2255 }
 0x464   :  { %v453_v41 = vmul.f32 %v2256_v38, %v2766_v21 }
 0x466   :  { %v578_v23 = vpop.f32.mrb[4].mxu0 }
 0x467   :  { %v585_v24 = vmul.f32 %v578_v23, %v534_v22  ;;  %v2083_v25 = vpop.f32.mrb[5].mxu0  ;;  %v2792_v23 = vld [vmem:[#allocation10 + $0x10] sm:$0xff] }
 0x468   :  { %v581_v27 = vpop.f32.mrb[6].mxu0  ;;  %v913_v25 = vld [vmem:[#allocation10 + $0x8] sm:$0xff]  ;;  %2106 = vmatprep.subr.msk.mxu1 %vm169_vm1, %v2792_v23 }
 0x469   :  { %v586_v28 = vmul.f32 %v581_v27, %v535_v26  ;;  %v2084_v17 = vpop.f32.mrb[7].mxu0  ;;  %589 = vrot.lane.b32.xlu1 %v585_v24, %s2482_s14  ;;  %v912_v24 = vld [vmem:[#allocation10] sm:$0xff]  ;;  %v803_v27 = vsub.s32 2, %v2667_v8 }
 0x46a   :  { %v2188_v26 = vpack.c.bf16 %v913_v25, %v912_v24 }
 0x46b   :  { %591 = vrot.lane.b32.xlu0 %v586_v28, %s2482_s14  ;;  %v2803_v28 = vsub.s32 3, %v2667_v8  ;;  %v804_v17 = vrot.slane %v2675_v12, %v803_v27 }
 0x46d   :  { %v1095_v52 = vrot.slane %v2813_v51, %v2803_v28 }
 0x49b   :  { %v493_v30 = vpop.f32.mrb[0].mxu1 }
 0x49c   :  { %v2077_v32 = vpop.f32.mrb[1].mxu1  ;;  %v500_v40 = vmul.f32 %v493_v30, %v452_v39  ;;  %v897_v30 = vrot.slane %v2675_v12, %v2803_v28 }
 0x49d   :  { %v496_v33 = vpop.f32.mrb[2].mxu1 }
 0x49e   :  { %v2078_v34 = vpop.f32.mrb[3].mxu1  ;;  %v501_v43 = vmul.f32 %v496_v33, %v453_v41 }
 0x4db   :  { %v590_v42 = vpop.permute.xlu1 %589 }
 0x4dc   :  { %v595_v44 = vsel %vm338_vm4, %v500_v40, %v590_v42 }
 0x4dd   :  { %2096 = vmatprep.mubr.msk.f32.mxu1 %vm141_vm8, %v595_v44  ;;  %v592_v45 = vpop.permute.xlu0 %591 }
 0x4de   :  { %v596_v46 = vsel %vm338_vm4, %v501_v43, %v592_v45 }
 0x4df   :  { %2097 = vmatmul.mubr.msk.f32.vlgmr.msra.gmra.mrb[4].mxu1 %vm141_vm8, %v596_v46 }
 0x4e0   :  { %2108 = vmatprep.mubr.msk.f32.mxu1 %vm162_vm0, %v2652_v1  ;;  %2107 = vmatpush3.msk.msra.mxu1 %vm169_vm1, %v2792_v23 }
 0x4e1   :  { %2189 = vmatprep.subr.bf16.mxu1 %v2188_v26 }
 0x4e3   :  { %2109 = vmatmul.mubr.msk.f32.vlgmr.msra.gmra.mrb[6].mxu1 %vm162_vm0, %v2657_v3 }
 0x4e4   :  { %2191 = vmatpush3.bf16.msra.mxu1 %v2188_v26 }
 0x4e5   :  { %2124 = vmatprep.subr.bf16.mxu1 %v2490_v6 }
 0x5b2   :  { %v2098_v57 = vpop.f32.mrb[4].mxu1 }
 0x5b3   :  { %v782_v58 = vadd.f32 %v2098_v57, %v780_v56  ;;  %v768_v59 = vpop.f32.mrb[5].mxu1 }
 0x5b4   :  { %v781_v11 = vadd.f32 %v780_v56, %v768_v59 }
 0x5b5   :  { %v786_v61 = vmul.f32 0.044715, %v782_v58  ;;  %v784_v15 = vmul.f32 0.5, %v782_v58 }
 0x5b6   :  { %v785_v62 = vmul.f32 0.044715, %v781_v11  ;;  %v783_v18 = vmul.f32 0.5, %v781_v11 }
 0x5b7   :  { %v788_v49 = vmul.f32 %v786_v61, %v782_v58 }
 0x5b8   :  { %v787_v29 = vmul.f32 %v785_v62, %v781_v11 }
 0x5b9   :  { %v790_v50 = vmul.f32 %v788_v49, %v782_v58 }
 0x5ba   :  { %v789_v31 = vmul.f32 %v787_v29, %v781_v11 }
 0x5bb   :  { %v792_v2 = vadd.f32 %v790_v50, %v782_v58 }
 0x5bc   :  { %v791_v4 = vadd.f32 %v789_v31, %v781_v11 }
 0x5bd   :  { %v794_v5 = vmul.f32 0.7978846, %v792_v2 }
 0x5be   :  { %v793_v7 = vmul.f32 0.7978846, %v791_v4 }
 0x5bf   :  { %2257 = vtanh.f32 %v794_v5 }
 0x5c0   :  { %2259 = vtanh.f32 %v793_v7 }
 0x5c9   :  { %v2258_v13 = vpop.eup %2257 }
 0x5ca   :  { %v2260_v14 = vpop.eup %2259  ;;  %v798_v16 = vadd.f32 1.0, %v2258_v13 }
 0x5cb   :  { %v797_v19 = vadd.f32 1.0, %v2260_v14 }
 0x5cc   :  { %v800_v22 = vmul.f32 %v798_v16, %v784_v15 }
 0x5cd   :  { %v799_v0 = vmul.f32 %v797_v19, %v783_v18 }
 0x5cf   :  { %2103 = vmatprep.mubr.msk.f32.mxu0 %vm141_vm8, %v799_v0 }
 0x5d0   :  { %2104 = vmatmul.mubr.msk.f32.vlgmr.msra.gmra.mrb[2].mxu0 %vm141_vm8, %v800_v22 }
 0x5d1   :  { %2120 = vmatprep.mubr.msk.bf16.mxu0 %vm2492_vm9, %v2490_v6 }
 0x6a3   :  { %v2105_v32 = vpop.f32.mrb[2].mxu0 }
 0x6a4   :  { %v891_v33 = vadd.f32 %v2105_v32, %v804_v17  ;;  %v885_v34 = vpop.f32.mrb[3].mxu0 }
 0x6a5   :  { %v886_v35 = vadd.f32 %v885_v34, %v804_v17 }
 0x6a6   :  { %v899_v36 = vadd.f32 %v897_v30, %v891_v33 }
 0x6a7   :  { %v898_v37 = vadd.f32 %v897_v30, %v886_v35 }
 0x6a8   :  { %v903_v38 = vmin.f32 %v899_v36, 0.0  ;;  %vm901_vm12 = vcmp.gt.f32.partialorder %v899_v36, 0.0 }
 0x6a9   :  { %v902_v39 = vmin.f32 %v898_v37, 0.0  ;;  %vm900_vm11 = vcmp.gt.f32.partialorder %v898_v37, 0.0 }
 0x6aa   :  { %v906_v40 = vmul.f32 1.442695, %v903_v38 }
 0x6ab   :  { %v904_v41 = vmul.f32 1.442695, %v902_v39 }
 0x6ac   :  { %2261 = vpow2.f32 %v906_v40 }
 0x6ad   :  { %2263 = vpow2.f32 %v904_v41 }
 0x6b6   :  { %v2262_v42 = vpop.eup %2261 }
 0x6b7   :  { %v2264_v43 = vpop.eup %2263  ;;  %v1974_v44 = vadd.f32 -1.0, %v2262_v42 }
 0x6b8   :  { %v1973_v45 = vadd.f32 -1.0, %v2264_v43 }
 0x6b9   :  { %v911_v12 = vsel %vm901_vm12, %v899_v36, %v1974_v44 }
 0x6ba   :  { %v910_v46 = vsel %vm900_vm11, %v898_v37, %v1973_v45 }
 0x6bb   :  { %2115 = vmatprep.mubr.msk.f32.mxu1 %vm141_vm8, %v910_v46 }
 0x6bc   :  { %2116 = vmatmul.mubr.msk.f32.vlgmr.msra.gmra.mrb[6].mxu1 %vm141_vm8, %v911_v12 }
 0x6bd   :  { %2126 = vmatprep.mubr.msk.bf16.mxu1 %vm2492_vm9, %v2490_v6 }
 0x78f   :  { %v2818_v54 = vpop.f32.mrb[6].mxu1 }
 0x790   :  { %v2820_v55 = vpop.f32.mrb[7].mxu1  ;;  %v1097_v58 = vmul.f32 %v2818_v54, %v1095_v52  ;;  %v1085_v59 = vmul.f32 %v2818_v54, %v1083_v53 }
 0x791   :  { %v1201_v56 = vpack.c.bf16 %v2818_v54, %v2820_v55  ;;  %v1096_v57 = vmul.f32 %v1095_v52, %v2820_v55  ;;  %v1084_v6 = vmul.f32 %v1083_v53, %v2820_v55  ;;  %v916_v53 = vld [vmem:[#allocation10 + $0x20] sm:$0xff] }
 0x792   :  { %v1101_v61 = vsel %vm338_vm4, %v1097_v58, 0.0  ;;  %v1089_v13 = vsel %vm338_vm4, %v1085_v59, 0.0 }
 0x793   :  { %2119 = vmatpush3.bf16.msra.mxu0 %v1201_v56  ;;  %1120 = vrot.lane.b32.xlu1 %v1096_v57, %s2491_s6  ;;  %v1098_v11 = vsel %vm338_vm4, %v1096_v57, 0.0  ;;  %v1086_v7 = vsel %vm338_vm4, %v1084_v6, 0.0  ;;  %v917_v57 = vld [vmem:[#allocation10 + $0x28] sm:$0xff] }
 0x794   :  { %1106 = vrot.lane.b32.xlu0 %v1084_v6, %s2491_s6  ;;  %v2853_v6 = vld [vmem:[#allocation10 + $0x30] sm:$0xff] }
 0x797   :  { %1122 = vrot.lane.b32.xlu1 %v1097_v58, %s2491_s6  ;;  %v1348_v58 = vrot.slane %v917_v57, 3 }
 0x79b   :  { %1108 = vrot.lane.b32.xlu1 %v1085_v59, %s2491_s6  ;;  %v1350_v59 = vrot.slane %v2853_v6, 3 }
 0x7b3   :  { %1099 = vadd.xlane.f32.xlu0 %v1098_v11 }
 0x7b7   :  { %1102 = vadd.xlane.f32.xlu0 %v1101_v61 }
 0x805   :  { %v1121_v62 = vpop.permute.xlu1 %1120 }
 0x806   :  { %v1126_v49 = vsel %vm338_vm4, %v1121_v62, 0.0  ;;  %v1107_v29 = vpop.permute.xlu0 %1106 }
 0x807   :  { %1127 = vadd.xlane.f32.xlu1 %v1126_v49  ;;  %v1112_v2 = vsel %vm338_vm4, %v1107_v29, 0.0 }
 0x809   :  { %v1123_v50 = vpop.permute.xlu1 %1122 }
 0x80a   :  { %v1129_v31 = vsel %vm338_vm4, %v1123_v50, 0.0 }
 0x80b   :  { %1130 = vadd.xlane.f32.xlu0 %v1129_v31  ;;  %1113 = vadd.xlane.f32.xlu1 %v1112_v2 }
 0x80d   :  { %v1109_v4 = vpop.permute.xlu1 %1108 }
 0x80e   :  { %v1115_v5 = vsel %vm338_vm4, %v1109_v4, 0.0 }
 0x80f   :  { %1116 = vadd.xlane.f32.xlu0 %v1115_v5 }
 0x813   :  { %1087 = vadd.xlane.f32.xlu0 %v1086_v7 }
 0x817   :  { %1090 = vadd.xlane.f32.xlu0 %v1089_v13 }
 0x840   :  { %v1100_v14 = vpop.xlane.xlu0 %1099 }
 0x844   :  { %v1103_v16 = vpop.xlane.xlu0 %1102 }
 0x894   :  { %v1128_v18 = vpop.xlane.xlu1 %1127 }
 0x895   :  { %v1132_v19 = vsel %vm385_vm5, %v1100_v14, %v1128_v18 }
 0x896   :  { %1134 = vxpose.xlu1.b32.start [1/2] (short) (narrow) %v1132_v19, 8 }
 0x898   :  { %v1131_v15 = vpop.xlane.xlu0 %1130  ;;  %v1114_v24 = vpop.xlane.xlu1 %1113 }
 0x899   :  { %v1133_v0 = vsel %vm385_vm5, %v1103_v16, %v1131_v15 }
 0x89a   :  { %1135 = vxpose.xlu1.b32.end [2/2] (short) (narrow) %v1133_v0, 8 }
 0x89c   :  { %v1117_v22 = vpop.xlane.xlu0 %1116 }
 0x8a0   :  { %v1088_v25 = vpop.xlane.xlu0 %1087 }
 0x8a4   :  { %v1091_v30 = vpop.xlane.xlu0 %1090 }
 0x916   :  { %v1150_v26 = vpop.trf.xlu1 }
 0x917   :  { %v1169_v27 = vrot.slane %v1150_v26, %v2671_v10  ;;  %v1251_v17 = vrot.slane %v1150_v26, %v2710_v48 }
 0x919   :  { %v1171_v32 = vadd.f32 %v1169_v27, %v1091_v30  ;;  %v1252_v33 = vadd.f32 %v1251_v17, %v1114_v24  ;;  %v1253_v34 = vadd.f32 %v1251_v17, %v1117_v22  ;;  %v1170_v45 = vadd.f32 %v1169_v27, %v1088_v25 }
 0x91a   :  { %v1436_v30 = vrot.slane %v2792_v23, 3 }
 0x91b   :  { %v1173_v35 = vmul.f32 0.2, %v1171_v32  ;;  %v1254_v36 = vmul.f32 0.2, %v1252_v33  ;;  %v1255_v37 = vmul.f32 0.2, %v1253_v34 }
 0x91c   :  { %v1172_v46 = vmul.f32 0.2, %v1170_v45 }
 0x91d   :  { %v1256_v38 = vmax.f32 %v1252_v33, %v1254_v36  ;;  %v1175_v39 = vmax.f32 %v1171_v32, %v1173_v35  ;;  %v1257_v40 = vmax.f32 %v1253_v34, %v1255_v37  ;;  %v915_v32 = vld [vmem:[#allocation10 + $0x18] sm:$0xff] }
 0x91e   :  { %v1174_v12 = vmax.f32 %v1170_v45, %v1172_v46  ;;  %v1437_v33 = vrot.slane %v915_v32, 3 }
 0x91f   :  { %v1258_v41 = vadd.f32 %v1256_v38, %v2722_v60  ;;  %v1177_v42 = vadd.f32 %v1175_v39, %v2724_v63  ;;  %v1259_v48 = vadd.f32 %v1257_v40, %v2724_v63  ;;  %v1347_v63 = vrot.slane %v916_v53, 3 }
 0x920   :  { %v1176_v47 = vadd.f32 %v1174_v12, %v2722_v60  ;;  %v1438_v34 = vsel %vm1346_vm13, %v1436_v30, %v1437_v33 }
 0x921   :  { %v1260_v43 = vsel %vm141_vm8, %v1258_v41, -inf  ;;  %v1181_v10 = vsel %vm141_vm8, %v1177_v42, -inf  ;;  %v1263_v44 = vsel %vm141_vm8, %v1259_v48, -inf  ;;  %v1349_v11 = vsel %vm1346_vm13, %v1347_v63, %v1348_v58 }
 0x922   :  { %1261 = vmax.xlane.f32.xlu0 %v1260_v43  ;;  %1182 = vmax.xlane.f32.xlu1 %v1181_v10  ;;  %v1178_v52 = vsel %vm141_vm8, %v1176_v47, -inf  ;;  %v1439_v35 = vsel %vm1346_vm13, %v1437_v33, %v1347_v63 }
 0x923   :  { %v2196_v36 = vpack.c.bf16 %v1439_v35, %v1438_v34 }
 0x926   :  { %1264 = vmax.xlane.f32.xlu0 %v1263_v44 }
 0x93c   :  { %1284 = vrot.lane.b32.xlu0 %v1201_v56, %s2491_s6  ;;  %v1351_v56 = vsel %vm1346_vm13, %v1348_v58, %v1350_v59 }
 0x93d   :  { %v2192_v61 = vpack.c.bf16 %v1351_v56, %v1349_v11 }
 0x93f   :  { %2193 = vmatprep.subr.bf16.mxu0 %v2192_v61 }
 0x95b   :  { %1179 = vmax.xlane.f32.xlu0 %v1178_v52 }
 0x9af   :  { %v1262_v60 = vpop.xlane.xlu0 %1261  ;;  %v1183_v16 = vpop.xlane.xlu1 %1182 }
 0x9b0   :  { %v1266_v62 = vsub.f32 %v1258_v41, %v1262_v60  ;;  %v1185_v18 = vsub.f32 %v1177_v42, %v1183_v16 }
 0x9b2   :  { %v1268_v49 = vmul.f32 1.442695, %v1266_v62  ;;  %v1188_v19 = vmul.f32 1.442695, %v1185_v18 }
 0x9b3   :  { %v1265_v29 = vpop.xlane.xlu0 %1264 }
 0x9b4   :  { %v1267_v50 = vsub.f32 %v1259_v48, %v1265_v29  ;;  %2265 = vpow2.f32 %v1268_v49  ;;  %v919_v29 = vld [vmem:[#allocation10 + $0x38] sm:$0xff] }
 0x9b6   :  { %v1270_v31 = vmul.f32 1.442695, %v1267_v50  ;;  %v1553_v50 = vrot.slane %v919_v29, 3 }
 0x9b7   :  { %v1285_v2 = vpop.permute.xlu0 %1284 }
 0x9b8   :  { %2267 = vpow2.f32 %v1270_v31  ;;  %2125 = vmatpush3.bf16.msra.mxu1 %v1285_v2 }
 0x9b9   :  { %2269 = vpow2.f32 %v1188_v19 }
 0x9be   :  { %v2266_v4 = vpop.eup %2265 }
 0x9bf   :  { %v1272_v5 = vsel %vm141_vm8, %v2266_v4, 0.0 }
 0x9c0   :  { %1273 = vadd.xlane.f32.xlu0 %v1272_v5 }
 0x9c2   :  { %v2268_v7 = vpop.eup %2267 }
 0x9c3   :  { %v1275_v13 = vsel %vm141_vm8, %v2268_v7, 0.0  ;;  %v1282_v14 = vpack.c.bf16 %v2268_v7, %v2266_v4  ;;  %v2270_v24 = vpop.eup %2269  ;;  %v1525_v4 = vsub.s32 5, %v2667_v8 }
 0x9c4   :  { %1276 = vadd.xlane.f32.xlu0 %v1275_v13  ;;  %v1193_v17 = vsel %vm141_vm8, %v2270_v24, 0.0 }
 0x9c5   :  { %2127 = vmatmul.mubr.msk.bf16.vlgmr.msra.gmra.mrb[8].mxu1 %vm141_vm8, %v1282_v14  ;;  %v1526_v5 = vrot.slane %v2813_v51, %v1525_v4 }
 0x9e8   :  { %v1180_v15 = vpop.xlane.xlu0 %1179 }
 0x9e9   :  { %v1184_v0 = vsub.f32 %v1176_v47, %v1180_v15 }
 0x9eb   :  { %v1186_v22 = vmul.f32 1.442695, %v1184_v0 }
 0x9ed   :  { %2271 = vpow2.f32 %v1186_v22 }
 0x9f7   :  { %v2272_v25 = vpop.eup %2271 }
 0x9f8   :  { %v1190_v26 = vsel %vm141_vm8, %v2272_v25, 0.0  ;;  %v1200_v27 = vpack.c.bf16 %v2270_v24, %v2272_v25 }
 0x9f9   :  { %1191 = vadd.xlane.f32.xlu0 %v1190_v26 }
 0x9fa   :  { %2121 = vmatmul.mubr.msk.bf16.vlgmr.msra.gmra.mrb[8].mxu0 %vm141_vm8, %v1200_v27 }
 0x9fb   :  { %2134 = vmatprep.mubr.msk.f32.mxu0 %vm141_vm8, %v2820_v55  ;;  %2195 = vmatpush3.bf16.msra.mxu0 %v2192_v61 }
 0x9fc   :  { %2197 = vmatprep.subr.bf16.mxu0 %v2196_v36 }
 0x9fd   :  { %1194 = vadd.xlane.f32.xlu0 %v1193_v17 }
 0xa02   :  { %2135 = vmatmul.mubr.msk.f32.vlgmr.msra.gmra.mrb[12].mxu0 %vm141_vm8, %v2818_v54 }
 0xa03   :  { %2199 = vmatpush3.bf16.msra.mxu0 %v2196_v36  ;;  %v1660_v36 = vld [vmem:[#allocation11 + $0x10] sm:$0xf] }
 0xa04   :  { %2151 = vmatprep.subr.msk.mxu0 %vm169_vm1, %v1660_v36 }
 0xa4d   :  { %v1274_v37 = vpop.xlane.xlu0 %1273 }
 0xa4e   :  { %2273 = vrcp.f32 %v1274_v37  ;;  %v1658_v37 = vld [vmem:[#allocation11] sm:$0xff] }
 0xa51   :  { %v1277_v55 = vpop.xlane.xlu0 %1276 }
 0xa52   :  { %2275 = vrcp.f32 %v1277_v55  ;;  %v1659_v55 = vld [vmem:[#allocation11 + $0x8] sm:$0xff] }
 0xa58   :  { %v2274_v38 = vpop.eup %2273 }
 0xa59   :  { %v1280_v40 = vmul.f32 %v2274_v38, %v2764_v20  ;;  %v2204_v38 = vpack.c.bf16 %v1659_v55, %v1658_v37 }
 0xa5c   :  { %v2276_v39 = vpop.eup %2275 }
 0xa5d   :  { %v1281_v42 = vmul.f32 %v2276_v39, %v2766_v21  ;;  %v1549_v39 = vsub.s32 6, %v2667_v8 }
 0xa86   :  { %v1192_v47 = vpop.xlane.xlu0 %1191 }
 0xa87   :  { %2277 = vrcp.f32 %v1192_v47 }
 0xa8a   :  { %v1195_v52 = vpop.xlane.xlu0 %1194 }
 0xa8b   :  { %2279 = vrcp.f32 %v1195_v52 }
 0xa91   :  { %v2278_v53 = vpop.eup %2277 }
 0xa92   :  { %v1198_v63 = vmul.f32 %v2278_v53, %v2764_v20  ;;  %v1555_v20 = vrot.slane %v2813_v51, 3 }
 0xa94   :  { %v1556_v31 = vsel %vm1346_vm13, %v1553_v50, %v1555_v20 }
 0xa95   :  { %v2280_v57 = vpop.eup %2279 }
 0xa96   :  { %v1199_v11 = vmul.f32 %v2280_v57, %v2766_v21  ;;  %v1554_v21 = vsel %vm1346_vm13, %v1350_v59, %v1553_v50  ;;  %v1839_v57 = vld [vmem:[#allocation13 + $0x8] sm:$0xff] }
 0xa97   :  { %v2200_v2 = vpack.c.bf16 %v1556_v31, %v1554_v21 }
 0xa98   :  { %v1324_v54 = vpop.f32.mrb[8].mxu1 }
 0xa99   :  { %v1331_v41 = vmul.f32 %v1324_v54, %v1280_v40  ;;  %v2128_v23 = vpop.f32.mrb[9].mxu1  ;;  %2201 = vmatprep.subr.bf16.mxu1 %v2200_v2  ;;  %v1550_v40 = vrot.slane %v2813_v51, %v1549_v39  ;;  %v1643_v54 = vrot.slane %v2813_v51, %v347_v9  ;;  %v1838_v51 = vld [vmem:[#allocation13] sm:$0xff] }
 0xa9a   :  { %v1327_v43 = vpop.f32.mrb[10].mxu1  ;;  %2203 = vmatpush3.bf16.msra.mxu1 %v2200_v2 }
 0xa9b   :  { %v1332_v10 = vmul.f32 %v1327_v43, %v1281_v42  ;;  %v2129_v48 = vpop.f32.mrb[11].mxu1  ;;  %1335 = vrot.lane.b32.xlu0 %v1331_v41, %s2482_s14 }
 0xa9d   :  { %1337 = vrot.lane.b32.xlu1 %v1332_v10, %s2482_s14 }
 0xacd   :  { %v1239_v44 = vpop.f32.mrb[8].mxu0 }
 0xace   :  { %v2122_v45 = vpop.f32.mrb[9].mxu0  ;;  %v1246_v58 = vmul.f32 %v1239_v44, %v1198_v63  ;;  %v2208_v63 = vpack.c.bf16 %v1839_v57, %v1838_v51 }
 0xacf   :  { %v1242_v46 = vpop.f32.mrb[10].mxu0 }
 0xad0   :  { %v2123_v12 = vpop.f32.mrb[11].mxu0  ;;  %v1247_v61 = vmul.f32 %v1242_v46, %v1199_v11  ;;  %2209 = vmatprep.subr.bf16.mxu1 %v2208_v63  ;;  %v1841_v11 = vld [vmem:[#allocation13 + $0x18] sm:$0xff] }
 0xb0d   :  { %v1336_v56 = vpop.permute.xlu0 %1335 }
 0xb0e   :  { %v1341_v60 = vsel %vm338_vm4, %v1246_v58, %v1336_v56  ;;  %v1840_v58 = vld [vmem:[#allocation13 + $0x10] sm:$0xff] }
 0xb0f   :  { %v1338_v62 = vpop.permute.xlu1 %1337  ;;  %2141 = vmatprep.mubr.msk.f32.mxu0 %vm141_vm8, %v1341_v60  ;;  %v2212_v56 = vpack.c.bf16 %v1841_v11, %v1840_v58  ;;  %v1823_v60 = vrot.slane %v1660_v36, %v2803_v28 }
 0xb10   :  { %v1342_v49 = vsel %vm338_vm4, %v1247_v61, %v1338_v62  ;;  %v1842_v61 = vld [vmem:[#allocation13 + $0x20] sm:$0x7f] }
 0xb11   :  { %2142 = vmatmul.mubr.msk.f32.vlgmr.msra.gmra.mrb[12].mxu0 %vm141_vm8, %v1342_v49  ;;  %v1846_v28 = vrot.slane %v1842_v61, %v1549_v39 }
 0xb12   :  { %2153 = vmatprep.mubr.msk.f32.mxu0 %vm162_vm0, %v2652_v1  ;;  %2152 = vmatpush3.msk.msra.mxu0 %vm169_vm1, %v1660_v36  ;;  %vm1847_vm1 = vcmask 310272  }
 0xb13   :  { %2205 = vmatprep.subr.bf16.mxu0 %v2204_v38 }
 0xb15   :  { %2154 = vmatmul.mubr.msk.f32.vlgmr.msra.gmra.mrb[14].mxu0 %vm162_vm0, %v2657_v3  ;;  %vm1854_vm0 = vcmask 1045504  }
 0xb16   :  { %2207 = vmatpush3.bf16.msra.mxu0 %v2204_v38 }
 0xbe4   :  { %v2143_v7 = vpop.f32.mrb[12].mxu0 }
 0xbe5   :  { %v1528_v13 = vadd.f32 %v2143_v7, %v1526_v5  ;;  %v1514_v1 = vpop.f32.mrb[13].mxu0 }
 0xbe6   :  { %v1527_v14 = vadd.f32 %v1526_v5, %v1514_v1 }
 0xbe7   :  { %v1532_v16 = vmul.f32 0.044715, %v1528_v13  ;;  %v1530_v33 = vmul.f32 0.5, %v1528_v13 }
 0xbe8   :  { %v1531_v18 = vmul.f32 0.044715, %v1527_v14  ;;  %v1529_v30 = vmul.f32 0.5, %v1527_v14 }
 0xbe9   :  { %v1534_v19 = vmul.f32 %v1532_v16, %v1528_v13 }
 0xbea   :  { %v1533_v15 = vmul.f32 %v1531_v18, %v1527_v14 }
 0xbeb   :  { %v1536_v6 = vmul.f32 %v1534_v19, %v1528_v13 }
 0xbec   :  { %v1535_v0 = vmul.f32 %v1533_v15, %v1527_v14 }
 0xbed   :  { %v1538_v59 = vadd.f32 %v1536_v6, %v1528_v13 }
 0xbee   :  { %v1537_v22 = vadd.f32 %v1535_v0, %v1527_v14 }
 0xbef   :  { %v1540_v24 = vmul.f32 0.7978846, %v1538_v59 }
 0xbf0   :  { %v1539_v25 = vmul.f32 0.7978846, %v1537_v22 }
 0xbf1   :  { %2281 = vtanh.f32 %v1540_v24 }
 0xbf2   :  { %2283 = vtanh.f32 %v1539_v25 }
 0xbfb   :  { %v2282_v26 = vpop.eup %2281 }
 0xbfc   :  { %v2284_v27 = vpop.eup %2283  ;;  %v1544_v17 = vadd.f32 1.0, %v2282_v26 }
 0xbfd   :  { %v1543_v32 = vadd.f32 1.0, %v2284_v27 }
 0xbfe   :  { %v1546_v35 = vmul.f32 %v1544_v17, %v1530_v33 }
 0xbff   :  { %v1545_v34 = vmul.f32 %v1543_v32, %v1529_v30 }
 0xc01   :  { %2148 = vmatprep.mubr.msk.f32.mxu1 %vm141_vm8, %v1545_v34 }
 0xc02   :  { %2149 = vmatmul.mubr.msk.f32.vlgmr.msra.gmra.mrb[12].mxu1 %vm141_vm8, %v1546_v35 }
 0xc03   :  { %2211 = vmatpush3.bf16.msra.mxu1 %v2208_v63 }
 0xc04   :  { %2213 = vmatprep.subr.bf16.mxu1 %v2212_v56 }
 0xc07   :  { %2215 = vmatpush3.bf16.msra.mxu1 %v2212_v56 }
 0xc08   :  { %2171 = vmatprep.subr.msk.mxu1 %vm1854_vm0, %v1842_v61 }
 0xc0b   :  { %2172 = vmatpush3.msk.msra.mxu1 %vm1854_vm0, %v1842_v61 }
 0xcd5   :  { %v2150_v41 = vpop.f32.mrb[12].mxu1 }
 0xcd6   :  { %v1637_v23 = vadd.f32 %v2150_v41, %v1550_v40  ;;  %v1631_v42 = vpop.f32.mrb[13].mxu1 }
 0xcd7   :  { %v1632_v43 = vadd.f32 %v1631_v42, %v1550_v40 }
 0xcd8   :  { %v1645_v10 = vadd.f32 %v1643_v54, %v1637_v23 }
 0xcd9   :  { %v1644_v48 = vadd.f32 %v1643_v54, %v1632_v43 }
 0xcda   :  { %v1649_v44 = vmin.f32 %v1645_v10, 0.0  ;;  %vm1647_vm15 = vcmp.gt.f32.partialorder %v1645_v10, 0.0 }
 0xcdb   :  { %v1648_v45 = vmin.f32 %v1644_v48, 0.0  ;;  %vm1646_vm14 = vcmp.gt.f32.partialorder %v1644_v48, 0.0 }
 0xcdc   :  { %v1652_v46 = vmul.f32 1.442695, %v1649_v44 }
 0xcdd   :  { %v1650_v3 = vmul.f32 1.442695, %v1648_v45 }
 0xcde   :  { %2285 = vpow2.f32 %v1652_v46 }
 0xcdf   :  { %2287 = vpow2.f32 %v1650_v3 }
 0xce8   :  { %v2286_v12 = vpop.eup %2285 }
 0xce9   :  { %v2288_v47 = vpop.eup %2287  ;;  %v1989_v52 = vadd.f32 -1.0, %v2286_v12 }
 0xcea   :  { %v1988_v53 = vadd.f32 -1.0, %v2288_v47 }
 0xceb   :  { %v1657_v9 = vsel %vm1647_vm15, %v1645_v10, %v1989_v52 }
 0xcec   :  { %v1656_v8 = vsel %vm1646_vm14, %v1644_v48, %v1988_v53 }
 0xced   :  { %2160 = vmatprep.mubr.msk.f32.mxu0 %vm141_vm8, %v1656_v8 }
 0xcee   :  { %2161 = vmatmul.mubr.msk.f32.vlgmr.msra.gmra.mrb[14].mxu0 %vm141_vm8, %v1657_v9 }
 0xdc1   :  { %v2162_v62 = vpop.f32.mrb[14].mxu0 }
 0xdc2   :  { %v1825_v49 = vadd.f32 %v2162_v62, %v1823_v60  ;;  %v1811_v29 = vpop.f32.mrb[15].mxu0 }
 0xdc3   :  { %v1824_v20 = vadd.f32 %v1823_v60, %v1811_v29 }
 0xdc4   :  { %v1829_v50 = vmin.f32 %v1825_v49, 0.0  ;;  %vm1827_vm3 = vcmp.gt.f32.partialorder %v1825_v49, 0.0 }
 0xdc5   :  { %v1828_v21 = vmin.f32 %v1824_v20, 0.0  ;;  %vm1826_vm2 = vcmp.gt.f32.partialorder %v1824_v20, 0.0 }
 0xdc6   :  { %v1832_v31 = vmul.f32 1.442695, %v1829_v50 }
 0xdc7   :  { %v1830_v2 = vmul.f32 1.442695, %v1828_v21 }
 0xdc8   :  { %2289 = vpow2.f32 %v1832_v31 }
 0xdc9   :  { %2291 = vpow2.f32 %v1830_v2 }
 0xdd2   :  { %v2290_v4 = vpop.eup %2289 }
 0xdd3   :  { %v2292_v5 = vpop.eup %2291  ;;  %v1996_v7 = vadd.f32 -1.0, %v2290_v4 }
 0xdd4   :  { %v1995_v13 = vadd.f32 -1.0, %v2292_v5 }
 0xdd5   :  { %v1837_v14 = vsel %vm1827_vm3, %v1825_v49, %v1996_v7 }
 0xdd6   :  { %v1836_v1 = vsel %vm1826_vm2, %v1824_v20, %v1995_v13 }
 0xdd7   :  { %2173 = vmatprep.mubr.msk.f32.mxu1 %vm1847_vm1, %v1836_v1 }
 0xdd8   :  { %2174 = vmatmul.mubr.msk.f32.vlgmr.msra.gmra.mrb[14].mxu1 %vm1847_vm1, %v1837_v14 }
 0xeab   :  { %v2175_v16 = vpop.f32.mrb[14].mxu1 }
 0xeac   :  { %v1930_v18 = vadd.f32 %v2175_v16, %v1846_v28  ;;  %v1924_v19 = vpop.f32.mrb[15].mxu1 }
 0xead   :  { %v1925_v15 = vadd.f32 %v1924_v19, %v1846_v28 }
 0xeae   :  { %1934 = vst [vmem:[#allocation14 + $0x8] sm:$0xff] %v1930_v18 }
 0xeaf   :  { %1933 = vst [vmem:[#allocation14] sm:$0xff] %v1925_v15 }
 0xeb0   :  { %2458 = shalt.err (!%p2455_p4)
}
 0xeb1   :  { %s2459_s19 = scalar_lea.hbm %s2928_s7, 256 }
 0xeb2   :  { %p2460_p5 = scmp.ne.s32.totalorder %s2928_s7, %s2459_s19  ;;  %p2463_p6 = scmp.lt.u32.totalorder %s2459_s19, %s2928_s7 }
 0xeb4   :  { %p2465_p7 = pnand %p2463_p6, %p2460_p5 }
 0xeb6   :  { %2468 = shalt.err (!%p2465_p7)
}
 0xeb7   :  { %1946 = dma.vmem_to_hbm [thread:$0]  %s1941_s3, 256, %s2928_s7, [#allocation4], %s2481_s13, %s2481_s13, %s2482_s14  }
 0xeb8   :  { %2477 = dma.done.wait [#allocation4], 256  }
 0xeb9   :  { %2478 = vsyncadd [#allocation4], 4294967040 }
 0xeba   :  { %1950 = vsyncpa [#allocation3], 1 }
 0xebb   :  { %1951 = vsyncpa [#allocation6], 1 }
 0xebc   :  { %1952 = vsyncpa [#allocation9], 1 }
 0xebd   :  { %1953 = vsyncpa [#allocation12], 1 }
 0xebe   :  { %1954 = vsyncpa [#allocation4], 1 }

</bundles_post_ra>
